<compile_context>
chip_gen: v7x
topology: tpu7x:2x2x1
jax: 0.10.0
libtpu: 0.0.40
codegen_flags: <defaults>
</compile_context>

<pallas_src>
import functools

import jax
import jax.numpy as jnp
from jax.experimental import pallas as pl
from jax.experimental.pallas import tpu as pltpu


# ----------------------------- Pallas kernel -------------------------------

def _clip_text_kernel(h0_ref, mask_ref,
                      ln1_w, ln1_b, wq, bq, wk, bk, wv, bv, wo, bo,
                      ln2_w, ln2_b, w1, b1, w2, b2,
                      fln_w, fln_b,
                      out_ref, h_scr, *, n_heads, eps):
    """All CLIP text encoder layers fused; grid = (batch, layer).

    h0_ref  : (1, S, D) f32  embedded input (read at layer 0 only)
    mask_ref: (S, S)    f32  additive causal mask (0 / -1e9)
    w*      : stacked per-layer weights, leading layer axis blocked to 1
    out_ref : (1, S, D) f32  last_hidden_state (written at last layer only)
    h_scr   : (S, D)    f32  VMEM residual-stream carry across layers
    """
    l = pl.program_id(1)
    n_layers = pl.num_programs(1)

    @pl.when(l == 0)
    def _():
        h_scr[...] = h0_ref[0]

    h = h_scr[...]                                     # (S, D) f32
    S, D = h.shape
    scale = (D // n_heads) ** -0.5

    # ---- LayerNorm 1 (f32 statistics) ----
    mu = jnp.mean(h, axis=-1, keepdims=True)
    var = jnp.mean((h - mu) ** 2, axis=-1, keepdims=True)
    x = (h - mu) * jax.lax.rsqrt(var + eps) * ln1_w[0] + ln1_b[0]

    # ---- head-batched causal self-attention (bf16 matmuls, f32 accum) ----
    xb = jnp.broadcast_to(x.astype(jnp.bfloat16)[None], (n_heads, S, D))
    q = jnp.einsum('hsd,hde->hse', xb, wq[0],
                   preferred_element_type=jnp.float32) + bq[0]
    k = jnp.einsum('hsd,hde->hse', xb, wk[0],
                   preferred_element_type=jnp.float32) + bk[0]
    v = jnp.einsum('hsd,hde->hse', xb, wv[0],
                   preferred_element_type=jnp.float32) + bv[0]
    q = q * scale

    s = jnp.einsum('hqe,hke->hqk', q.astype(jnp.bfloat16),
                   k.astype(jnp.bfloat16),
                   preferred_element_type=jnp.float32)
    s = s + mask_ref[...][None]                        # causal (+pad) mask, f32
    s = s - jnp.max(s, axis=-1, keepdims=True)
    p = jnp.exp(s)
    p = p * pl.reciprocal(jnp.sum(p, axis=-1, keepdims=True), approx=True)

    o = jnp.einsum('hqk,hke->hqe', p.astype(jnp.bfloat16),
                   v.astype(jnp.bfloat16),
                   preferred_element_type=jnp.float32)
    # per-head output projection, then sum over heads (== concat @ Wo)
    attn = jnp.einsum('hqe,hed->hqd', o.astype(jnp.bfloat16), wo[0],
                      preferred_element_type=jnp.float32)
    attn = jnp.sum(attn, axis=0) + bo[0]
    h = h + attn                                       # residual 1

    # ---- LayerNorm 2 + quick-GELU MLP ----
    mu2 = jnp.mean(h, axis=-1, keepdims=True)
    var2 = jnp.mean((h - mu2) ** 2, axis=-1, keepdims=True)
    x2 = (h - mu2) * jax.lax.rsqrt(var2 + eps) * ln2_w[0] + ln2_b[0]
    y = jnp.dot(x2.astype(jnp.bfloat16), w1[0],
                preferred_element_type=jnp.float32) + b1[0]
    y = y * jax.nn.sigmoid(1.702 * y)                  # CLIP quick_gelu (f32)
    y = jnp.dot(y.astype(jnp.bfloat16), w2[0],
                preferred_element_type=jnp.float32) + b2[0]
    h = h + y                                          # residual 2

    h_scr[...] = h

    @pl.when(l == n_layers - 1)
    def _():
        mu3 = jnp.mean(h, axis=-1, keepdims=True)
        var3 = jnp.mean((h - mu3) ** 2, axis=-1, keepdims=True)
        out_ref[0] = (h - mu3) * jax.lax.rsqrt(var3 + eps) * fln_w[...] + fln_b[...]


# ------------------------------- wrapper ------------------------------------

_W_ORDER = ('ln1_w', 'ln1_b', 'wq', 'bq', 'wk', 'bk', 'wv', 'bv',
            'wo', 'bo', 'ln2_w', 'ln2_b', 'w1', 'b1', 'w2', 'b2')


def clip_text_encoder(h0, mask, layers, fln_w, fln_b, *, n_heads, eps=1e-5,
                      vmem_limit_bytes=48 * 1024 * 1024):
    """Run all fused encoder layers + final LayerNorm in one pallas_call."""
    B, S, D = h0.shape
    L = layers['wq'].shape[0]
    weights = [layers[k] for k in _W_ORDER]

    def layer_spec(arr):
        nd = arr.ndim
        return pl.BlockSpec((1,) + tuple(arr.shape[1:]),
                            lambda b, l, _nd=nd: (l,) + (0,) * (_nd - 1))

    in_specs = ([pl.BlockSpec((1, S, D), lambda b, l: (b, 0, 0)),   # h0
                 pl.BlockSpec((S, S), lambda b, l: (0, 0))]         # mask
                + [layer_spec(w) for w in weights]
                + [pl.BlockSpec(fln_w.shape, lambda b, l: (0, 0)),
                   pl.BlockSpec(fln_b.shape, lambda b, l: (0, 0))])

    return pl.pallas_call(
        functools.partial(_clip_text_kernel, n_heads=n_heads, eps=eps),
        out_shape=jax.ShapeDtypeStruct((B, S, D), jnp.float32),
        grid_spec=pltpu.PrefetchScalarGridSpec(
            num_scalar_prefetch=0,
            grid=(B, L),
            in_specs=in_specs,
            out_specs=pl.BlockSpec((1, S, D), lambda b, l: (b, 0, 0)),
            scratch_shapes=[pltpu.VMEM((S, D), jnp.float32)]),
        compiler_params=pltpu.CompilerParams(
            dimension_semantics=("parallel", "arbitrary"),
            vmem_limit_bytes=vmem_limit_bytes),
    )(h0, mask, *weights, fln_w, fln_b)


def frozen_clip_embedder(tokens, params, *, n_heads):
    """tokens: [B, S] int32 -> last_hidden_state [B, S, D] float32."""
    B, S = tokens.shape
    # TODO(synk): CLIPTokenizer (BPE text tokenization) has no Pallas/JAX
    # equivalent; synthetic token ids stand in for tokenizer output.  The
    # embedding gather stays in plain JAX (glue, not a hot loop).
    h0 = jnp.take(params['token_emb'], tokens, axis=0)
    h0 = (h0 + params['pos_emb'][None, :S, :]).astype(jnp.float32)

    row = jax.lax.broadcasted_iota(jnp.int32, (S, S), 0)
    col = jax.lax.broadcasted_iota(jnp.int32, (S, S), 1)
    mask = jnp.where(col <= row, 0.0, -1e9).astype(jnp.float32)   # causal

    return clip_text_encoder(h0, mask, params['layers'],
                             params['final_ln_w'], params['final_ln_b'],
                             n_heads=n_heads)


# --------------------------- parameter init --------------------------------

def init_clip_text_params(key, *, vocab, max_pos, d_model, n_heads, n_layers, d_ff):
    """Weights directly in the stacked, per-head, bf16 kernel layout.

    (From a real CLIP checkpoint: Wq (D,D) -> reshape(D,H,hd).transpose(1,0,2),
     Wo (D,D) -> reshape(H,hd,D), then stack over layers and cast to bf16.)
    """
    hd = d_model // n_heads
    L, D, H, F = n_layers, d_model, n_heads, d_ff
    s = 0.02
    ks = iter(jax.random.split(key, 8))

    def rnd(shape, dtype):
        return (s * jax.random.normal(next(ks), shape, jnp.float32)).astype(dtype)

    def zeros(shape):
        return jnp.zeros(shape, jnp.float32)

    params = {
        'token_emb': rnd((vocab, D), jnp.float32),
        'pos_emb':   rnd((max_pos, D), jnp.float32),
        'final_ln_w': jnp.ones((1, D), jnp.float32),
        'final_ln_b': jnp.zeros((1, D), jnp.float32),
        'layers': {
            'ln1_w': jnp.ones((L, 1, D), jnp.float32),
            'ln1_b': zeros((L, 1, D)),
            'wq': rnd((L, H, D, hd), jnp.bfloat16),
            'bq': zeros((L, H, 1, hd)),
            'wk': rnd((L, H, D, hd), jnp.bfloat16),
            'bk': zeros((L, H, 1, hd)),
            'wv': rnd((L, H, D, hd), jnp.bfloat16),
            'bv': zeros((L, H, 1, hd)),
            'wo': rnd((L, H, hd, D), jnp.bfloat16),
            'bo': zeros((L, 1, D)),
            'ln2_w': jnp.ones((L, 1, D), jnp.float32),
            'ln2_b': zeros((L, 1, D)),
            'w1': rnd((L, D, F), jnp.bfloat16),
            'b1': zeros((L, 1, F)),
            'w2': rnd((L, F, D), jnp.bfloat16),
            'b2': zeros((L, 1, D)),
        },
    }
    return params


# --------------------------------- main -------------------------------------

if __name__ == "__main__":
    # Small CLIP-text-style config (real CLIP-L/14: vocab=49408, D=768,
    # 12 layers, 12 heads, max_length=77 — scaled down here).
    VOCAB, MAX_LEN, D_MODEL, N_HEADS, N_LAYERS, D_FF = 512, 16, 128, 4, 2, 512
    BATCH, SEQ = 2, 8

    key = jax.random.PRNGKey(0)
    pkey, tkey = jax.random.split(key)
    params = init_clip_text_params(pkey, vocab=VOCAB, max_pos=MAX_LEN,
                                   d_model=D_MODEL, n_heads=N_HEADS,
                                   n_layers=N_LAYERS, d_ff=D_FF)

    tokens = jax.random.randint(tkey, (BATCH, SEQ), 0, VOCAB, dtype=jnp.int32)

    z = frozen_clip_embedder(tokens, params, n_heads=N_HEADS)
    z = jax.block_until_ready(z)
    assert z.shape == (BATCH, SEQ, D_MODEL) and z.dtype == jnp.float32
    assert bool(jnp.all(jnp.isfinite(z)))
    print("KERNEL_OK")
</pallas_src>

<mosaic_0001>
module attributes {stable_mosaic.version = 11 : i64} {
  func.func @_clip_text_kernel(%arg0: i32, %arg1: i32, %arg2: memref<1x8x128xf32, #tpu.memory_space<vmem>>, %arg3: memref<8x8xf32, #tpu.memory_space<vmem>>, %arg4: memref<1x1x128xf32, #tpu.memory_space<vmem>>, %arg5: memref<1x1x128xf32, #tpu.memory_space<vmem>>, %arg6: memref<1x4x128x32xbf16, #tpu.memory_space<vmem>>, %arg7: memref<1x4x1x32xf32, #tpu.memory_space<vmem>>, %arg8: memref<1x4x128x32xbf16, #tpu.memory_space<vmem>>, %arg9: memref<1x4x1x32xf32, #tpu.memory_space<vmem>>, %arg10: memref<1x4x128x32xbf16, #tpu.memory_space<vmem>>, %arg11: memref<1x4x1x32xf32, #tpu.memory_space<vmem>>, %arg12: memref<1x4x32x128xbf16, #tpu.memory_space<vmem>>, %arg13: memref<1x1x128xf32, #tpu.memory_space<vmem>>, %arg14: memref<1x1x128xf32, #tpu.memory_space<vmem>>, %arg15: memref<1x1x128xf32, #tpu.memory_space<vmem>>, %arg16: memref<1x128x512xbf16, #tpu.memory_space<vmem>>, %arg17: memref<1x1x512xf32, #tpu.memory_space<vmem>>, %arg18: memref<1x512x128xbf16, #tpu.memory_space<vmem>>, %arg19: memref<1x1x128xf32, #tpu.memory_space<vmem>>, %arg20: memref<1x128xf32, #tpu.memory_space<vmem>>, %arg21: memref<1x128xf32, #tpu.memory_space<vmem>>, %arg22: memref<1x8x128xf32, #tpu.memory_space<vmem>>, %arg23: memref<8x128xf32, #tpu.memory_space<vmem>>) attributes {dimension_semantics = [#tpu.dimension_semantics<parallel>, #tpu.dimension_semantics<arbitrary>], iteration_bounds = array<i64: 2, 2>, scalar_prefetch = 0 : i64, scratch_operands = 1 : i64, tpu.core_type = #tpu.core_type<tc>, window_params = [{transform_indices = @transform_0, window_bounds = array<i64: 1, 8, 128>}, {pipeline_mode = #tpu.pipeline_mode<synchronous>, transform_indices = @transform_1, window_bounds = array<i64: 8, 8>}, {transform_indices = @transform_2, window_bounds = array<i64: 1, 1, 128>}, {transform_indices = @transform_3, window_bounds = array<i64: 1, 1, 128>}, {transform_indices = @transform_4, window_bounds = array<i64: 1, 4, 128, 32>}, {transform_indices = @transform_5, window_bounds = array<i64: 1, 4, 1, 32>}, {transform_indices = @transform_6, window_bounds = array<i64: 1, 4, 128, 32>}, {transform_indices = @transform_7, window_bounds = array<i64: 1, 4, 1, 32>}, {transform_indices = @transform_8, window_bounds = array<i64: 1, 4, 128, 32>}, {transform_indices = @transform_9, window_bounds = array<i64: 1, 4, 1, 32>}, {transform_indices = @transform_10, window_bounds = array<i64: 1, 4, 32, 128>}, {transform_indices = @transform_11, window_bounds = array<i64: 1, 1, 128>}, {transform_indices = @transform_12, window_bounds = array<i64: 1, 1, 128>}, {transform_indices = @transform_13, window_bounds = array<i64: 1, 1, 128>}, {transform_indices = @transform_14, window_bounds = array<i64: 1, 128, 512>}, {transform_indices = @transform_15, window_bounds = array<i64: 1, 1, 512>}, {transform_indices = @transform_16, window_bounds = array<i64: 1, 512, 128>}, {transform_indices = @transform_17, window_bounds = array<i64: 1, 1, 128>}, {pipeline_mode = #tpu.pipeline_mode<synchronous>, transform_indices = @transform_18, window_bounds = array<i64: 1, 128>}, {pipeline_mode = #tpu.pipeline_mode<synchronous>, transform_indices = @transform_19, window_bounds = array<i64: 1, 128>}, {transform_indices = @transform_20, window_bounds = array<i64: 1, 8, 128>}]} {
    %c0_i32 = arith.constant 0 : i32
    %0 = arith.cmpi eq, %arg1, %c0_i32 : i32
    %1 = arith.extui %0 : i1 to i32
    %c0_i32_0 = arith.constant 0 : i32
    %2 = arith.cmpi ne, %1, %c0_i32_0 : i32
    scf.if %2 {
      %c0_85 = arith.constant 0 : index
      %c0_86 = arith.constant 0 : index
      %c0_87 = arith.constant 0 : index
      %142 = vector.load %arg2[%c0_85, %c0_86, %c0_87] : memref<1x8x128xf32, #tpu.memory_space<vmem>>, vector<1x8x128xf32>
      %143 = vector.shape_cast %142 : vector<1x8x128xf32> to vector<8x128xf32>
      %c0_88 = arith.constant 0 : index
      %c0_89 = arith.constant 0 : index
      %144 = vector.load %arg23[%c0_88, %c0_89] : memref<8x128xf32, #tpu.memory_space<vmem>>, vector<8x128xf32>
      tpu.vector_store %arg23[%c0_88, %c0_89], %143 {strides = array<i32>} : memref<8x128xf32, #tpu.memory_space<vmem>>, vector<8x128xf32>,
    } else {
    }
    %c0 = arith.constant 0 : index
    %c0_1 = arith.constant 0 : index
    %3 = vector.load %arg23[%c0, %c0_1] : memref<8x128xf32, #tpu.memory_space<vmem>>, vector<8x128xf32>
    %cst = arith.constant dense<0.000000e+00> : vector<8xf32>
    %4 = vector.multi_reduction <add>, %3, %cst [1] : vector<8x128xf32> to vector<8xf32>
    %5 = vector.shape_cast %4 : vector<8xf32> to vector<8x1xf32>
    %cst_2 = arith.constant 1.280000e+02 : f32
    %6 = vector.broadcast %cst_2 : f32 to vector<8x1xf32>
    %7 = arith.divf %5, %6 : vector<8x1xf32>
    %8 = vector.broadcast %7 : vector<8x1xf32> to vector<8x128xf32>
    %9 = arith.subf %3, %8 : vector<8x128xf32>
    %10 = arith.mulf %9, %9 : vector<8x128xf32>
    %cst_3 = arith.constant dense<0.000000e+00> : vector<8xf32>
    %11 = vector.multi_reduction <add>, %10, %cst_3 [1] : vector<8x128xf32> to vector<8xf32>
    %12 = vector.shape_cast %11 : vector<8xf32> to vector<8x1xf32>
    %cst_4 = arith.constant 1.280000e+02 : f32
    %13 = vector.broadcast %cst_4 : f32 to vector<8x1xf32>
    %14 = arith.divf %12, %13 : vector<8x1xf32>
    %15 = vector.broadcast %7 : vector<8x1xf32> to vector<8x128xf32>
    %16 = arith.subf %3, %15 : vector<8x128xf32>
    %cst_5 = arith.constant 9.99999974E-6 : f32
    %17 = vector.broadcast %cst_5 : f32 to vector<8x1xf32>
    %18 = arith.addf %14, %17 : vector<8x1xf32>
    %19 = math.rsqrt %18 : vector<8x1xf32>
    %20 = vector.broadcast %19 : vector<8x1xf32> to vector<8x128xf32>
    %21 = arith.mulf %16, %20 : vector<8x128xf32>
    %c0_6 = arith.constant 0 : index
    %c0_7 = arith.constant 0 : index
    %c0_8 = arith.constant 0 : index
    %22 = vector.load %arg4[%c0_6, %c0_7, %c0_8] : memref<1x1x128xf32, #tpu.memory_space<vmem>>, vector<1x1x128xf32>
    %23 = vector.shape_cast %22 : vector<1x1x128xf32> to vector<1x128xf32>
    %24 = vector.broadcast %23 : vector<1x128xf32> to vector<8x128xf32>
    %25 = arith.mulf %21, %24 : vector<8x128xf32>
    %c0_9 = arith.constant 0 : index
    %c0_10 = arith.constant 0 : index
    %c0_11 = arith.constant 0 : index
    %26 = vector.load %arg5[%c0_9, %c0_10, %c0_11] : memref<1x1x128xf32, #tpu.memory_space<vmem>>, vector<1x1x128xf32>
    %27 = vector.shape_cast %26 : vector<1x1x128xf32> to vector<1x128xf32>
    %28 = vector.broadcast %27 : vector<1x128xf32> to vector<8x128xf32>
    %29 = arith.addf %25, %28 : vector<8x128xf32>
    %30 = arith.truncf %29 : vector<8x128xf32> to vector<8x128xbf16>
    %31 = vector.shape_cast %30 : vector<8x128xbf16> to vector<1x8x128xbf16>
    %32 = vector.shape_cast %31 : vector<1x8x128xbf16> to vector<1x8x128xbf16>
    %33 = vector.broadcast %32 : vector<1x8x128xbf16> to vector<4x8x128xbf16>
    %c0_12 = arith.constant 0 : index
    %c0_13 = arith.constant 0 : index
    %c0_14 = arith.constant 0 : index
    %c0_15 = arith.constant 0 : index
    %34 = vector.load %arg6[%c0_12, %c0_13, %c0_14, %c0_15] : memref<1x4x128x32xbf16, #tpu.memory_space<vmem>>, vector<1x4x128x32xbf16>
    %35 = vector.shape_cast %34 : vector<1x4x128x32xbf16> to vector<4x128x32xbf16>
    "tpu.trace_start"() <{level = 10 : i32, message = "hsd,hde->hse"}> : () -> ()
    %cst_16 = arith.constant dense<0.000000e+00> : vector<4x8x32xf32>
    %36 = tpu.matmul %33, %35, %cst_16 {dimension_numbers = #tpu.dot_dimension_numbers<[2], [1], [1], [2], [0, 0, 0, 1, 1, 2], [0], [0]>} : vector<4x8x128xbf16>, vector<4x128x32xbf16>, vector<4x8x32xf32> -> vector<4x8x32xf32>
    "tpu.trace_stop"() : () -> ()
    %c0_17 = arith.constant 0 : index
    %c0_18 = arith.constant 0 : index
    %c0_19 = arith.constant 0 : index
    %c0_20 = arith.constant 0 : index
    %37 = vector.load %arg7[%c0_17, %c0_18, %c0_19, %c0_20] : memref<1x4x1x32xf32, #tpu.memory_space<vmem>>, vector<1x4x1x32xf32>
    %38 = vector.shape_cast %37 : vector<1x4x1x32xf32> to vector<4x1x32xf32>
    %39 = vector.broadcast %38 : vector<4x1x32xf32> to vector<4x8x32xf32>
    %40 = arith.addf %36, %39 : vector<4x8x32xf32>
    %c0_21 = arith.constant 0 : index
    %c0_22 = arith.constant 0 : index
    %c0_23 = arith.constant 0 : index
    %c0_24 = arith.constant 0 : index
    %41 = vector.load %arg8[%c0_21, %c0_22, %c0_23, %c0_24] : memref<1x4x128x32xbf16, #tpu.memory_space<vmem>>, vector<1x4x128x32xbf16>
    %42 = vector.shape_cast %41 : vector<1x4x128x32xbf16> to vector<4x128x32xbf16>
    "tpu.trace_start"() <{level = 10 : i32, message = "hsd,hde->hse"}> : () -> ()
    %cst_25 = arith.constant dense<0.000000e+00> : vector<4x8x32xf32>
    %43 = tpu.matmul %33, %42, %cst_25 {dimension_numbers = #tpu.dot_dimension_numbers<[2], [1], [1], [2], [0, 0, 0, 1, 1, 2], [0], [0]>} : vector<4x8x128xbf16>, vector<4x128x32xbf16>, vector<4x8x32xf32> -> vector<4x8x32xf32>
    "tpu.trace_stop"() : () -> ()
    %c0_26 = arith.constant 0 : index
    %c0_27 = arith.constant 0 : index
    %c0_28 = arith.constant 0 : index
    %c0_29 = arith.constant 0 : index
    %44 = vector.load %arg9[%c0_26, %c0_27, %c0_28, %c0_29] : memref<1x4x1x32xf32, #tpu.memory_space<vmem>>, vector<1x4x1x32xf32>
    %45 = vector.shape_cast %44 : vector<1x4x1x32xf32> to vector<4x1x32xf32>
    %46 = vector.broadcast %45 : vector<4x1x32xf32> to vector<4x8x32xf32>
    %47 = arith.addf %43, %46 : vector<4x8x32xf32>
    %c0_30 = arith.constant 0 : index
    %c0_31 = arith.constant 0 : index
    %c0_32 = arith.constant 0 : index
    %c0_33 = arith.constant 0 : index
    %48 = vector.load %arg10[%c0_30, %c0_31, %c0_32, %c0_33] : memref<1x4x128x32xbf16, #tpu.memory_space<vmem>>, vector<1x4x128x32xbf16>
    %49 = vector.shape_cast %48 : vector<1x4x128x32xbf16> to vector<4x128x32xbf16>
    "tpu.trace_start"() <{level = 10 : i32, message = "hsd,hde->hse"}> : () -> ()
    %cst_34 = arith.constant dense<0.000000e+00> : vector<4x8x32xf32>
    %50 = tpu.matmul %33, %49, %cst_34 {dimension_numbers = #tpu.dot_dimension_numbers<[2], [1], [1], [2], [0, 0, 0, 1, 1, 2], [0], [0]>} : vector<4x8x128xbf16>, vector<4x128x32xbf16>, vector<4x8x32xf32> -> vector<4x8x32xf32>
    "tpu.trace_stop"() : () -> ()
    %c0_35 = arith.constant 0 : index
    %c0_36 = arith.constant 0 : index
    %c0_37 = arith.constant 0 : index
    %c0_38 = arith.constant 0 : index
    %51 = vector.load %arg11[%c0_35, %c0_36, %c0_37, %c0_38] : memref<1x4x1x32xf32, #tpu.memory_space<vmem>>, vector<1x4x1x32xf32>
    %52 = vector.shape_cast %51 : vector<1x4x1x32xf32> to vector<4x1x32xf32>
    %53 = vector.broadcast %52 : vector<4x1x32xf32> to vector<4x8x32xf32>
    %54 = arith.addf %50, %53 : vector<4x8x32xf32>
    %cst_39 = arith.constant 0.176776692 : f32
    %55 = vector.broadcast %cst_39 : f32 to vector<4x8x32xf32>
    %56 = arith.mulf %40, %55 : vector<4x8x32xf32>
    %57 = arith.truncf %56 : vector<4x8x32xf32> to vector<4x8x32xbf16>
    %58 = arith.truncf %47 : vector<4x8x32xf32> to vector<4x8x32xbf16>
    "tpu.trace_start"() <{level = 10 : i32, message = "hqe,hke->hqk"}> : () -> ()
    %cst_40 = arith.constant dense<0.000000e+00> : vector<4x8x8xf32>
    %59 = tpu.matmul %57, %58, %cst_40 {dimension_numbers = #tpu.dot_dimension_numbers<[2], [2], [1], [1], [0, 0, 0, 1, 1, 1], [0], [0]>} : vector<4x8x32xbf16>, vector<4x8x32xbf16>, vector<4x8x8xf32> -> vector<4x8x8xf32>
    "tpu.trace_stop"() : () -> ()
    %c0_41 = arith.constant 0 : index
    %c0_42 = arith.constant 0 : index
    %60 = vector.load %arg3[%c0_41, %c0_42] : memref<8x8xf32, #tpu.memory_space<vmem>>, vector<8x8xf32>
    %61 = vector.shape_cast %60 : vector<8x8xf32> to vector<1x8x8xf32>
    %62 = vector.broadcast %61 : vector<1x8x8xf32> to vector<4x8x8xf32>
    %63 = arith.addf %59, %62 : vector<4x8x8xf32>
    %cst_43 = arith.constant dense<0xFF800000> : vector<4x8xf32>
    %64 = vector.multi_reduction <maximumf>, %63, %cst_43 [2] : vector<4x8x8xf32> to vector<4x8xf32>
    %65 = vector.shape_cast %64 : vector<4x8xf32> to vector<4x8x1xf32>
    %66 = vector.broadcast %65 : vector<4x8x1xf32> to vector<4x8x8xf32>
    %67 = arith.subf %63, %66 : vector<4x8x8xf32>
    %68 = math.exp %67 : vector<4x8x8xf32>
    %cst_44 = arith.constant dense<0.000000e+00> : vector<4x8xf32>
    %69 = vector.multi_reduction <add>, %68, %cst_44 [2] : vector<4x8x8xf32> to vector<4x8xf32>
    %70 = vector.shape_cast %69 : vector<4x8xf32> to vector<4x8x1xf32>
    %71 = tpu.reciprocal %70 {approx = true} : vector<4x8x1xf32> -> vector<4x8x1xf32>
    %72 = vector.broadcast %71 : vector<4x8x1xf32> to vector<4x8x8xf32>
    %73 = arith.mulf %68, %72 : vector<4x8x8xf32>
    %74 = arith.truncf %73 : vector<4x8x8xf32> to vector<4x8x8xbf16>
    %75 = arith.truncf %54 : vector<4x8x32xf32> to vector<4x8x32xbf16>
    "tpu.trace_start"() <{level = 10 : i32, message = "hqk,hke->hqe"}> : () -> ()
    %cst_45 = arith.constant dense<0.000000e+00> : vector<4x8x32xf32>
    %76 = tpu.matmul %74, %75, %cst_45 {dimension_numbers = #tpu.dot_dimension_numbers<[2], [1], [1], [2], [0, 0, 0, 1, 1, 2], [0], [0]>} : vector<4x8x8xbf16>, vector<4x8x32xbf16>, vector<4x8x32xf32> -> vector<4x8x32xf32>
    "tpu.trace_stop"() : () -> ()
    %77 = arith.truncf %76 : vector<4x8x32xf32> to vector<4x8x32xbf16>
    %c0_46 = arith.constant 0 : index
    %c0_47 = arith.constant 0 : index
    %c0_48 = arith.constant 0 : index
    %c0_49 = arith.constant 0 : index
    %78 = vector.load %arg12[%c0_46, %c0_47, %c0_48, %c0_49] : memref<1x4x32x128xbf16, #tpu.memory_space<vmem>>, vector<1x4x32x128xbf16>
    %79 = vector.shape_cast %78 : vector<1x4x32x128xbf16> to vector<4x32x128xbf16>
    "tpu.trace_start"() <{level = 10 : i32, message = "hqe,hed->hqd"}> : () -> ()
    %cst_50 = arith.constant dense<0.000000e+00> : vector<4x8x128xf32>
    %80 = tpu.matmul %77, %79, %cst_50 {dimension_numbers = #tpu.dot_dimension_numbers<[2], [1], [1], [2], [0, 0, 0, 1, 1, 2], [0], [0]>} : vector<4x8x32xbf16>, vector<4x32x128xbf16>, vector<4x8x128xf32> -> vector<4x8x128xf32>
    "tpu.trace_stop"() : () -> ()
    %cst_51 = arith.constant dense<0.000000e+00> : vector<8x128xf32>
    %81 = vector.multi_reduction <add>, %80, %cst_51 [0] : vector<4x8x128xf32> to vector<8x128xf32>
    %c0_52 = arith.constant 0 : index
    %c0_53 = arith.constant 0 : index
    %c0_54 = arith.constant 0 : index
    %82 = vector.load %arg13[%c0_52, %c0_53, %c0_54] : memref<1x1x128xf32, #tpu.memory_space<vmem>>, vector<1x1x128xf32>
    %83 = vector.shape_cast %82 : vector<1x1x128xf32> to vector<1x128xf32>
    %84 = vector.broadcast %83 : vector<1x128xf32> to vector<8x128xf32>
    %85 = arith.addf %81, %84 : vector<8x128xf32>
    %86 = arith.addf %3, %85 : vector<8x128xf32>
    %cst_55 = arith.constant dense<0.000000e+00> : vector<8xf32>
    %87 = vector.multi_reduction <add>, %86, %cst_55 [1] : vector<8x128xf32> to vector<8xf32>
    %88 = vector.shape_cast %87 : vector<8xf32> to vector<8x1xf32>
    %cst_56 = arith.constant 1.280000e+02 : f32
    %89 = vector.broadcast %cst_56 : f32 to vector<8x1xf32>
    %90 = arith.divf %88, %89 : vector<8x1xf32>
    %91 = vector.broadcast %90 : vector<8x1xf32> to vector<8x128xf32>
    %92 = arith.subf %86, %91 : vector<8x128xf32>
    %93 = arith.mulf %92, %92 : vector<8x128xf32>
    %cst_57 = arith.constant dense<0.000000e+00> : vector<8xf32>
    %94 = vector.multi_reduction <add>, %93, %cst_57 [1] : vector<8x128xf32> to vector<8xf32>
    %95 = vector.shape_cast %94 : vector<8xf32> to vector<8x1xf32>
    %cst_58 = arith.constant 1.280000e+02 : f32
    %96 = vector.broadcast %cst_58 : f32 to vector<8x1xf32>
    %97 = arith.divf %95, %96 : vector<8x1xf32>
    %98 = vector.broadcast %90 : vector<8x1xf32> to vector<8x128xf32>
    %99 = arith.subf %86, %98 : vector<8x128xf32>
    %cst_59 = arith.constant 9.99999974E-6 : f32
    %100 = vector.broadcast %cst_59 : f32 to vector<8x1xf32>
    %101 = arith.addf %97, %100 : vector<8x1xf32>
    %102 = math.rsqrt %101 : vector<8x1xf32>
    %103 = vector.broadcast %102 : vector<8x1xf32> to vector<8x128xf32>
    %104 = arith.mulf %99, %103 : vector<8x128xf32>
    %c0_60 = arith.constant 0 : index
    %c0_61 = arith.constant 0 : index
    %c0_62 = arith.constant 0 : index
    %105 = vector.load %arg14[%c0_60, %c0_61, %c0_62] : memref<1x1x128xf32, #tpu.memory_space<vmem>>, vector<1x1x128xf32>
    %106 = vector.shape_cast %105 : vector<1x1x128xf32> to vector<1x128xf32>
    %107 = vector.broadcast %106 : vector<1x128xf32> to vector<8x128xf32>
    %108 = arith.mulf %104, %107 : vector<8x128xf32>
    %c0_63 = arith.constant 0 : index
    %c0_64 = arith.constant 0 : index
    %c0_65 = arith.constant 0 : index
    %109 = vector.load %arg15[%c0_63, %c0_64, %c0_65] : memref<1x1x128xf32, #tpu.memory_space<vmem>>, vector<1x1x128xf32>
    %110 = vector.shape_cast %109 : vector<1x1x128xf32> to vector<1x128xf32>
    %111 = vector.broadcast %110 : vector<1x128xf32> to vector<8x128xf32>
    %112 = arith.addf %108, %111 : vector<8x128xf32>
    %113 = arith.truncf %112 : vector<8x128xf32> to vector<8x128xbf16>
    %c0_66 = arith.constant 0 : index
    %c0_67 = arith.constant 0 : index
    %c0_68 = arith.constant 0 : index
    %114 = vector.load %arg16[%c0_66, %c0_67, %c0_68] : memref<1x128x512xbf16, #tpu.memory_space<vmem>>, vector<1x128x512xbf16>
    %115 = vector.shape_cast %114 : vector<1x128x512xbf16> to vector<128x512xbf16>
    %cst_69 = arith.constant dense<0.000000e+00> : vector<8x512xf32>
    %116 = tpu.matmul %113, %115, %cst_69 {dimension_numbers = #tpu.dot_dimension_numbers<[1], [0], [0], [1], [0, 0, 1, 1], [], []>} : vector<8x128xbf16>, vector<128x512xbf16>, vector<8x512xf32> -> vector<8x512xf32>
    %c0_70 = arith.constant 0 : index
    %c0_71 = arith.constant 0 : index
    %c0_72 = arith.constant 0 : index
    %117 = vector.load %arg17[%c0_70, %c0_71, %c0_72] : memref<1x1x512xf32, #tpu.memory_space<vmem>>, vector<1x1x512xf32>
    %118 = vector.shape_cast %117 : vector<1x1x512xf32> to vector<1x512xf32>
    %119 = vector.broadcast %118 : vector<1x512xf32> to vector<8x512xf32>
    %120 = arith.addf %116, %119 : vector<8x512xf32>
    %cst_73 = arith.constant 1.702000e+00 : f32
    %121 = vector.broadcast %cst_73 : f32 to vector<8x512xf32>
    %122 = arith.mulf %121, %120 : vector<8x512xf32>
    %123 = arith.negf %122 : vector<8x512xf32>
    %124 = math.exp %123 : vector<8x512xf32>
    %cst_74 = arith.constant 1.000000e+00 : f32
    %125 = vector.broadcast %cst_74 : f32 to vector<8x512xf32>
    %126 = arith.addf %125, %124 : vector<8x512xf32>
    %127 = arith.divf %125, %126 : vector<8x512xf32>
    %128 = arith.mulf %120, %127 : vector<8x512xf32>
    %129 = arith.truncf %128 : vector<8x512xf32> to vector<8x512xbf16>
    %c0_75 = arith.constant 0 : index
    %c0_76 = arith.constant 0 : index
    %c0_77 = arith.constant 0 : index
    %130 = vector.load %arg18[%c0_75, %c0_76, %c0_77] : memref<1x512x128xbf16, #tpu.memory_space<vmem>>, vector<1x512x128xbf16>
    %131 = vector.shape_cast %130 : vector<1x512x128xbf16> to vector<512x128xbf16>
    %cst_78 = arith.constant dense<0.000000e+00> : vector<8x128xf32>
    %132 = tpu.matmul %129, %131, %cst_78 {dimension_numbers = #tpu.dot_dimension_numbers<[1], [0], [0], [1], [0, 0, 1, 1], [], []>} : vector<8x512xbf16>, vector<512x128xbf16>, vector<8x128xf32> -> vector<8x128xf32>
    %c0_79 = arith.constant 0 : index
    %c0_80 = arith.constant 0 : index
    %c0_81 = arith.constant 0 : index
    %133 = vector.load %arg19[%c0_79, %c0_80, %c0_81] : memref<1x1x128xf32, #tpu.memory_space<vmem>>, vector<1x1x128xf32>
    %134 = vector.shape_cast %133 : vector<1x1x128xf32> to vector<1x128xf32>
    %135 = vector.broadcast %134 : vector<1x128xf32> to vector<8x128xf32>
    %136 = arith.addf %132, %135 : vector<8x128xf32>
    %137 = arith.addf %86, %136 : vector<8x128xf32>
    %c0_82 = arith.constant 0 : index
    %c0_83 = arith.constant 0 : index
    %138 = vector.load %arg23[%c0_82, %c0_83] : memref<8x128xf32, #tpu.memory_space<vmem>>, vector<8x128xf32>
    tpu.vector_store %arg23[%c0_82, %c0_83], %137 {strides = array<i32>} : memref<8x128xf32, #tpu.memory_space<vmem>>, vector<8x128xf32>,
    %c1_i32 = arith.constant 1 : i32
    %139 = arith.cmpi eq, %arg1, %c1_i32 : i32
    %140 = arith.extui %139 : i1 to i32
    %c0_i32_84 = arith.constant 0 : i32
    %141 = arith.cmpi ne, %140, %c0_i32_84 : i32
    scf.if %141 {
      %cst_85 = arith.constant dense<0.000000e+00> : vector<8xf32>
      %142 = vector.multi_reduction <add>, %137, %cst_85 [1] : vector<8x128xf32> to vector<8xf32>
      %143 = vector.shape_cast %142 : vector<8xf32> to vector<8x1xf32>
      %cst_86 = arith.constant 1.280000e+02 : f32
      %144 = vector.broadcast %cst_86 : f32 to vector<8x1xf32>
      %145 = arith.divf %143, %144 : vector<8x1xf32>
      %146 = vector.broadcast %145 : vector<8x1xf32> to vector<8x128xf32>
      %147 = arith.subf %137, %146 : vector<8x128xf32>
      %148 = arith.mulf %147, %147 : vector<8x128xf32>
      %cst_87 = arith.constant dense<0.000000e+00> : vector<8xf32>
      %149 = vector.multi_reduction <add>, %148, %cst_87 [1] : vector<8x128xf32> to vector<8xf32>
      %150 = vector.shape_cast %149 : vector<8xf32> to vector<8x1xf32>
      %cst_88 = arith.constant 1.280000e+02 : f32
      %151 = vector.broadcast %cst_88 : f32 to vector<8x1xf32>
      %152 = arith.divf %150, %151 : vector<8x1xf32>
      %153 = vector.broadcast %145 : vector<8x1xf32> to vector<8x128xf32>
      %154 = arith.subf %137, %153 : vector<8x128xf32>
      %cst_89 = arith.constant 9.99999974E-6 : f32
      %155 = vector.broadcast %cst_89 : f32 to vector<8x1xf32>
      %156 = arith.addf %152, %155 : vector<8x1xf32>
      %157 = math.rsqrt %156 : vector<8x1xf32>
      %158 = vector.broadcast %157 : vector<8x1xf32> to vector<8x128xf32>
      %159 = arith.mulf %154, %158 : vector<8x128xf32>
      %c0_90 = arith.constant 0 : index
      %c0_91 = arith.constant 0 : index
      %160 = vector.load %arg20[%c0_90, %c0_91] : memref<1x128xf32, #tpu.memory_space<vmem>>, vector<1x128xf32>
      %161 = vector.broadcast %160 : vector<1x128xf32> to vector<8x128xf32>
      %162 = arith.mulf %159, %161 : vector<8x128xf32>
      %c0_92 = arith.constant 0 : index
      %c0_93 = arith.constant 0 : index
      %163 = vector.load %arg21[%c0_92, %c0_93] : memref<1x128xf32, #tpu.memory_space<vmem>>, vector<1x128xf32>
      %164 = vector.broadcast %163 : vector<1x128xf32> to vector<8x128xf32>
      %165 = arith.addf %162, %164 : vector<8x128xf32>
      %c0_94 = arith.constant 0 : index
      %c0_95 = arith.constant 0 : index
      %c0_96 = arith.constant 0 : index
      %166 = vector.load %arg22[%c0_94, %c0_95, %c0_96] : memref<1x8x128xf32, #tpu.memory_space<vmem>>, vector<1x8x128xf32>
      %167 = vector.shape_cast %166 : vector<1x8x128xf32> to vector<8x128xf32>
      %168 = vector.shape_cast %165 : vector<8x128xf32> to vector<1x8x128xf32>
      tpu.vector_store %arg22[%c0_94, %c0_95, %c0_96], %168 {strides = array<i32>} : memref<1x8x128xf32, #tpu.memory_space<vmem>>, vector<1x8x128xf32>,
    } else {
    }
    return
  }
  func.func @transform_0(%arg0: i32, %arg1: i32) -> (i32, i32, i32) {
    %c0_i32 = arith.constant 0 : i32
    %c0_i32_0 = arith.constant 0 : i32
    %c0_i32_1 = arith.constant 0 : i32
    return %arg0, %c0_i32, %c0_i32_0 : i32, i32, i32
  }
  func.func @transform_1(%arg0: i32, %arg1: i32) -> (i32, i32) {
    %c0_i32 = arith.constant 0 : i32
    %c0_i32_0 = arith.constant 0 : i32
    %c0_i32_1 = arith.constant 0 : i32
    return %c0_i32, %c0_i32_0 : i32, i32
  }
  func.func @transform_2(%arg0: i32, %arg1: i32) -> (i32, i32, i32) {
    %c0_i32 = arith.constant 0 : i32
    %c0_i32_0 = arith.constant 0 : i32
    %c0_i32_1 = arith.constant 0 : i32
    return %arg1, %c0_i32, %c0_i32_0 : i32, i32, i32
  }
  func.func @transform_3(%arg0: i32, %arg1: i32) -> (i32, i32, i32) {
    %c0_i32 = arith.constant 0 : i32
    %c0_i32_0 = arith.constant 0 : i32
    %c0_i32_1 = arith.constant 0 : i32
    return %arg1, %c0_i32, %c0_i32_0 : i32, i32, i32
  }
  func.func @transform_4(%arg0: i32, %arg1: i32) -> (i32, i32, i32, i32) {
    %c0_i32 = arith.constant 0 : i32
    %c0_i32_0 = arith.constant 0 : i32
    %c0_i32_1 = arith.constant 0 : i32
    %c0_i32_2 = arith.constant 0 : i32
    return %arg1, %c0_i32, %c0_i32_0, %c0_i32_1 : i32, i32, i32, i32
  }
  func.func @transform_5(%arg0: i32, %arg1: i32) -> (i32, i32, i32, i32) {
    %c0_i32 = arith.constant 0 : i32
    %c0_i32_0 = arith.constant 0 : i32
    %c0_i32_1 = arith.constant 0 : i32
    %c0_i32_2 = arith.constant 0 : i32
    return %arg1, %c0_i32, %c0_i32_0, %c0_i32_1 : i32, i32, i32, i32
  }
  func.func @transform_6(%arg0: i32, %arg1: i32) -> (i32, i32, i32, i32) {
    %c0_i32 = arith.constant 0 : i32
    %c0_i32_0 = arith.constant 0 : i32
    %c0_i32_1 = arith.constant 0 : i32
    %c0_i32_2 = arith.constant 0 : i32
    return %arg1, %c0_i32, %c0_i32_0, %c0_i32_1 : i32, i32, i32, i32
  }
  func.func @transform_7(%arg0: i32, %arg1: i32) -> (i32, i32, i32, i32) {
    %c0_i32 = arith.constant 0 : i32
    %c0_i32_0 = arith.constant 0 : i32
    %c0_i32_1 = arith.constant 0 : i32
    %c0_i32_2 = arith.constant 0 : i32
    return %arg1, %c0_i32, %c0_i32_0, %c0_i32_1 : i32, i32, i32, i32
  }
  func.func @transform_8(%arg0: i32, %arg1: i32) -> (i32, i32, i32, i32) {
    %c0_i32 = arith.constant 0 : i32
    %c0_i32_0 = arith.constant 0 : i32
    %c0_i32_1 = arith.constant 0 : i32
    %c0_i32_2 = arith.constant 0 : i32
    return %arg1, %c0_i32, %c0_i32_0, %c0_i32_1 : i32, i32, i32, i32
  }
  func.func @transform_9(%arg0: i32, %arg1: i32) -> (i32, i32, i32, i32) {
    %c0_i32 = arith.constant 0 : i32
    %c0_i32_0 = arith.constant 0 : i32
    %c0_i32_1 = arith.constant 0 : i32
    %c0_i32_2 = arith.constant 0 : i32
    return %arg1, %c0_i32, %c0_i32_0, %c0_i32_1 : i32, i32, i32, i32
  }
  func.func @transform_10(%arg0: i32, %arg1: i32) -> (i32, i32, i32, i32) {
    %c0_i32 = arith.constant 0 : i32
    %c0_i32_0 = arith.constant 0 : i32
    %c0_i32_1 = arith.constant 0 : i32
    %c0_i32_2 = arith.constant 0 : i32
    return %arg1, %c0_i32, %c0_i32_0, %c0_i32_1 : i32, i32, i32, i32
  }
  func.func @transform_11(%arg0: i32, %arg1: i32) -> (i32, i32, i32) {
    %c0_i32 = arith.constant 0 : i32
    %c0_i32_0 = arith.constant 0 : i32
    %c0_i32_1 = arith.constant 0 : i32
    return %arg1, %c0_i32, %c0_i32_0 : i32, i32, i32
  }
  func.func @transform_12(%arg0: i32, %arg1: i32) -> (i32, i32, i32) {
    %c0_i32 = arith.constant 0 : i32
    %c0_i32_0 = arith.constant 0 : i32
    %c0_i32_1 = arith.constant 0 : i32
    return %arg1, %c0_i32, %c0_i32_0 : i32, i32, i32
  }
  func.func @transform_13(%arg0: i32, %arg1: i32) -> (i32, i32, i32) {
    %c0_i32 = arith.constant 0 : i32
    %c0_i32_0 = arith.constant 0 : i32
    %c0_i32_1 = arith.constant 0 : i32
    return %arg1, %c0_i32, %c0_i32_0 : i32, i32, i32
  }
  func.func @transform_14(%arg0: i32, %arg1: i32) -> (i32, i32, i32) {
    %c0_i32 = arith.constant 0 : i32
    %c0_i32_0 = arith.constant 0 : i32
    %c0_i32_1 = arith.constant 0 : i32
    return %arg1, %c0_i32, %c0_i32_0 : i32, i32, i32
  }
  func.func @transform_15(%arg0: i32, %arg1: i32) -> (i32, i32, i32) {
    %c0_i32 = arith.constant 0 : i32
    %c0_i32_0 = arith.constant 0 : i32
    %c0_i32_1 = arith.constant 0 : i32
    return %arg1, %c0_i32, %c0_i32_0 : i32, i32, i32
  }
  func.func @transform_16(%arg0: i32, %arg1: i32) -> (i32, i32, i32) {
    %c0_i32 = arith.constant 0 : i32
    %c0_i32_0 = arith.constant 0 : i32
    %c0_i32_1 = arith.constant 0 : i32
    return %arg1, %c0_i32, %c0_i32_0 : i32, i32, i32
  }
  func.func @transform_17(%arg0: i32, %arg1: i32) -> (i32, i32, i32) {
    %c0_i32 = arith.constant 0 : i32
    %c0_i32_0 = arith.constant 0 : i32
    %c0_i32_1 = arith.constant 0 : i32
    return %arg1, %c0_i32, %c0_i32_0 : i32, i32, i32
  }
  func.func @transform_18(%arg0: i32, %arg1: i32) -> (i32, i32) {
    %c0_i32 = arith.constant 0 : i32
    %c0_i32_0 = arith.constant 0 : i32
    %c0_i32_1 = arith.constant 0 : i32
    return %c0_i32, %c0_i32_0 : i32, i32
  }
  func.func @transform_19(%arg0: i32, %arg1: i32) -> (i32, i32) {
    %c0_i32 = arith.constant 0 : i32
    %c0_i32_0 = arith.constant 0 : i32
    %c0_i32_1 = arith.constant 0 : i32
    return %c0_i32, %c0_i32_0 : i32, i32
  }
  func.func @transform_20(%arg0: i32, %arg1: i32) -> (i32, i32, i32) {
    %c0_i32 = arith.constant 0 : i32
    %c0_i32_0 = arith.constant 0 : i32
    %c0_i32_1 = arith.constant 0 : i32
    return %arg0, %c0_i32, %c0_i32_0 : i32, i32, i32
  }
}

</mosaic_0001>

<bundles_post_ra>
// kernel: tpu_custom_call.1
= control target key start
LH: loop header
LB: loop body
LE: loop exit
PB: predicated region body
PF: predicated region fallthrough
CT: control target
= control target key end

     0   :  { %s5863_s0 = inlined_call_operand.vmem [shape: f32[2,8,128], index: 0, kind: input, shape index: {}]   ;;  %s5864_s1 = inlined_call_operand.vmem [shape: f32[8,8], index: 1, kind: input, shape index: {}]   ;;  %s5865_s2 = inlined_call_operand.vmem [shape: f32[2,1,128], index: 2, kind: input, shape index: {}]   ;;  %s5866_s3 = inlined_call_operand.vmem [shape: f32[2,1,128], index: 3, kind: input, shape index: {}]   ;;  %s5867_s4 = inlined_call_operand.vmem [shape: bf16[2,4,128,32], index: 4, kind: input, shape index: {}]   ;;  %s5868_s5 = inlined_call_operand.vmem [shape: f32[2,4,1,32], index: 5, kind: input, shape index: {}]   ;;  %s5869_s6 = inlined_call_operand.vmem [shape: bf16[2,4,128,32], index: 6, kind: input, shape index: {}]   ;;  %s5870_s7 = inlined_call_operand.vmem [shape: f32[2,4,1,32], index: 7, kind: input, shape index: {}]   ;;  %s5871_s8 = inlined_call_operand.vmem [shape: bf16[2,4,128,32], index: 8, kind: input, shape index: {}]   ;;  %s5872_s9 = inlined_call_operand.vmem [shape: f32[2,4,1,32], index: 9, kind: input, shape index: {}]   ;;  %s5873_s10 = inlined_call_operand.vmem [shape: bf16[2,4,32,128], index: 10, kind: input, shape index: {}]   ;;  %s5874_s11 = inlined_call_operand.vmem [shape: f32[2,1,128], index: 11, kind: input, shape index: {}]   ;;  %s5875_s12 = inlined_call_operand.vmem [shape: f32[2,1,128], index: 12, kind: input, shape index: {}]   ;;  %s5876_s13 = inlined_call_operand.vmem [shape: f32[2,1,128], index: 13, kind: input, shape index: {}]   ;;  %s5877_s14 = inlined_call_operand.vmem [shape: bf16[2,128,512], index: 14, kind: input, shape index: {}]   ;;  %s5878_s15 = inlined_call_operand.vmem [shape: f32[2,1,512], index: 15, kind: input, shape index: {}]   ;;  %s5879_s16 = inlined_call_operand.vmem [shape: bf16[2,512,128], index: 16, kind: input, shape index: {}]   ;;  %s5880_s17 = inlined_call_operand.vmem [shape: f32[2,1,128], index: 17, kind: input, shape index: {}]   ;;  %s5881_s18 = inlined_call_operand.vmem [shape: f32[1,128], index: 18, kind: input, shape index: {}]   ;;  %s5882_s19 = inlined_call_operand.vmem [shape: f32[1,128], index: 19, kind: input, shape index: {}]   ;;  %s5883_s20 = inlined_call_operand.hbm [shape: f32[2,8,128], index: 20, kind: output, shape index: {}]  }
   0x1   :  { %5901 = sst [smem:[#allocation21_spill]] %s5863_s0 }
   0x2   :  { %5902 = sst [smem:[#allocation22_spill]] %s5864_s1 }
   0x3   :  { %5903 = sst [smem:[#allocation23_spill]] %s5865_s2 }
   0x4   :  { %5904 = sst [smem:[#allocation24_spill]] %s5866_s3 }
   0x5   :  { %5905 = sst [smem:[#allocation25_spill]] %s5867_s4 }
   0x6   :  { %5906 = sst [smem:[#allocation26_spill]] %s5868_s5 }
   0x7   :  { %5907 = sst [smem:[#allocation27_spill]] %s5869_s6 }
   0x8   :  { %5908 = sst [smem:[#allocation28_spill]] %s5870_s7 }
   0x9   :  { %5909 = sst [smem:[#allocation29_spill]] %s5871_s8 }
   0xa   :  { %5910 = sst [smem:[#allocation30_spill]] %s5872_s9 }
   0xb   :  { %5911 = sst [smem:[#allocation31_spill]] %s5873_s10 }
   0xc   :  { %5912 = sst [smem:[#allocation32_spill]] %s5875_s12 }
   0xd   :  { %5913 = sst [smem:[#allocation33_spill]] %s5878_s15 }
   0xe   :  { %5914 = sst [smem:[#allocation34_spill]] %s5879_s16 }
   0xf   :  { %5915 = sst [smem:[#allocation35_spill]] %s5880_s17 }
  0x10   :  { %5916 = sst [smem:[#allocation36_spill]] %s5881_s18 }
  0x11   :  { %5917 = sst [smem:[#allocation37_spill]] %s5882_s19 }
  0x12   :  { %5918 = sst [smem:[#allocation38_spill]] %s5883_s20 }
  0x13   :  { %25 = vsyncpa [#allocation4], 0 }
  0x14   :  { %27 = vsyncpa [#allocation4 + $0x1], 0  ;;  %s5202_s1 = smov 0   ;;  %s5204_s22 = smov 0  }
  0x15   :  { %s5206_s23 = smov 0   ;;  %s5208_s24 = smov 0  }
  0x16   :  { %s5210_s2 = smov 0   ;;  %s5212_s25 = smov 0  }
  0x17   :  { %s5214_s3 = smov 0   ;;  %s5216_s26 = smov 0  }
  0x18 LB: > { %5919 = sst [smem:[#allocation6_spill]] %s5063_s1  ;;  %s3961_s27 = sadd.s32 4294967295, %s5091_s26   ;;  %s5091_s26 = sphi %s5216_s26, %s33_s26   ;;  %s5087_s3 = sphi %s5214_s3, %s5980_s3   ;;  %s5083_s25 = sphi %s5212_s25, %s5979_s25   ;;  %s5079_s2 = sphi %s5210_s2, %s5978_s2   ;;  %s5075_s24 = sphi %s5208_s24, %s5977_s24   ;;  %s5071_s23 = sphi %s5206_s23, %s5976_s23   ;;  %s5067_s22 = sphi %s5204_s22, %s5975_s22   ;;  %s5063_s1 = sphi %s5202_s1, %s5974_s1  }
  0x19   : > { %5920 = sst [smem:[#allocation7_spill]] %s5067_s22  ;;  %s3962_s28 = sadd.s32 4294967294, %s5091_s26  }
  0x1a   : > { %5921 = sst [smem:[#allocation8_spill]] %s5071_s23  ;;  %s42_s4 = sadd.s32 1, %s5083_s25 }
  0x1b   : > { %5922 = sst [smem:[#allocation9_spill]] %s5075_s24  ;;  %p43_p0 = scmp.ge.s32.totalorder %s42_s4, 2 }
  0x1c   : > { %5923 = sst [smem:[#allocation10_spill]] %s5079_s2  ;;  %s45_s29 = sadd.s32 1, %s5087_s3 }
  0x1d   : > { %5924 = sst [smem:[#allocation11_spill]] %s5083_s25  ;;  %p567_p1 = scmp.ne.s32.totalorder %s5071_s23, %s5067_s22 }
  0x1e   : > { %5925 = sst [smem:[#allocation12_spill]] %s5087_s3  ;;  %p568_p2 = scmp.eq.s32.totalorder %s3961_s27, 3 }
  0x1f   : > { %5926 = sst [smem:[#allocation13_spill]] %s5091_s26  ;;  %s5982_s4 = smov (%p43_p0, %s42_s4), 0 }
  0x20   : > { %5927 = sst [smem:[#allocation14_spill]] %s5982_s4  ;;  %s5984_s29 = smov (!%p43_p0, %s45_s29), %s5087_s3 }
  0x21   : > { %p5251_p3 = por %p568_p2, %p567_p1  ;;  %p573_p4 = scmp.ne.s32.totalorder %s5067_s22, %s5063_s1 }
  0x22   : > { %p47_p5 = scmp.ge.s32.totalorder %s5984_s29, 2  ;;  %p574_p6 = scmp.eq.s32.totalorder %s3962_s28, 3 }
  0x23   : > { %s5928_s30 = scalar_select %p5251_p3, 1, 0 }
  0x24   : > { %p3965_p7 = scmp.ge.s32.totalorder %s5091_s26, 1  ;;  %p720_p8 = scmp.lt.s32.totalorder %s5091_s26, 5 }
  0x25   : > { %5929 = sst [smem:[#allocation15_spill]] %s5928_s30  ;;  %s5986_s29 = smov (%p47_p5, %s5984_s29), 0 }
  0x26   : > { %5930 = sst [smem:[#allocation16_spill]] %s5986_s29  ;;  %p5261_p9 = por %p574_p6, %p573_p4 }
  0x27   : > { %p721_p10 = pnand %p3965_p7, %p720_p8  ;;  %s554_s21 = ssub.s32 %s5087_s3, %s5986_s29 }
  0x28   : > { %s5931_s0 = scalar_select %p5261_p9, 1, 0 }
  0x29   : > { %s557_s27 = sadd.s32 1, %s5071_s23  ;;  %p555_p11 = scmp.eq.s32.totalorder %s554_s21, 0 }
  0x2a   : > { %5932 = sst [smem:[#allocation17_spill]] %s5931_s0  ;;  %724 = sbr.rel (%p721_p10) target bundleno = 2802 (0xaf2), region = 100 }
  0x2b   : > { %s5269_s4 = scalar_select %p555_p11, %s5071_s23, %s557_s27  }
  0x2d   : > { %5933 = sst [smem:[#allocation18_spill]] %s5269_s4 }
  0x31   : > { %s5890_s28 = sand.u32 1, %s5067_s22   ;;  %p841_p12 = scmp.lt.s32.totalorder %s5079_s2, 1 }
  0x32   : > { %s5275_s25 = sshll.u32 %s5890_s28, 3  ;;  %p845_p13 = scmp.lt.s32.totalorder %s5075_s24, 1 }
  0x33   : > { %s842_s0 = scalar_select %p841_p12, %s5079_s2, 1 }
  0x34   : > { %s5280_s1 = scalar_select %p845_p13, %s5075_s24, 1 }
  0x35   : > { %s3967_s21 = sshll.u32 %s842_s0, 3  ;;  %s5934_s3 = sld [smem:[#allocation21_spill]] }
  0x36   : > { %s4194_s18 = sshll.u32 %s5280_s1, 8  ;;  %s5937_s16 = sld [smem:[#allocation25_spill]] }
  0x37   : > { %s5300_s0 = sshll.u32 %s5280_s1, 2  ;;  %s5938_s5 = sld [smem:[#allocation26_spill]] }
  0x38   : > { %s5939_s6 = sld [smem:[#allocation27_spill]]  ;;  %s5940_s7 = sld [smem:[#allocation28_spill]] }
  0x39   : > { %s5941_s8 = sld [smem:[#allocation29_spill]]  ;;  %s5942_s9 = sld [smem:[#allocation30_spill]] }
  0x3a   : > { %s4197_s19 = sshll.u32 %s5280_s1, 6  ;;  %s5944_s10 = sld [smem:[#allocation31_spill]] }
  0x3b   : > { %s844_s4 = scalar_lea.vmem %s5934_s3, %s3967_s21  ;;  %s891_s27 = scalar_lea.vmem %s5876_s13, %s5280_s1 }
  0x3c   : > { %s5297_s15 = scalar_lea.vmem %s5937_s16, %s4194_s18  ;;  %s5947_s22 = sld [smem:[#allocation33_spill]] }
  0x3d   : > { %s5306_s23 = scalar_lea.vmem %s5938_s5, %s5300_s0  ;;  %s5948_s17 = sld [smem:[#allocation34_spill]] }
  0x3e   : > { %s5311_s26 = scalar_lea.vmem %s5939_s6, %s4194_s18  ;;  %s5317_s24 = scalar_lea.vmem %s5940_s7, %s5300_s0 }
  0x3f   : > { %s5322_s21 = scalar_lea.vmem %s5941_s8, %s4194_s18  ;;  %s5328_s29 = scalar_lea.vmem %s5942_s9, %s5300_s0 }
  0x40   : > { %5943 = sst [smem:[#allocation19_spill]] %s5328_s29  ;;  %s5334_s2 = scalar_lea.vmem %s5944_s10, %s4197_s19 }
  0x41   : > { %5945 = sst [smem:[#allocation20_spill]] %s5334_s2  ;;  %s5351_s29 = scalar_lea.vmem %s5877_s14, %s4194_s18 }
  0x42   : > { %s900_s10 = scalar_lea.vmem %s5947_s22, %s5300_s0  ;;  %s5949_s30 = sld [smem:[#allocation35_spill]] }
  0x43   : > { %s5360_s16 = scalar_lea.vmem %s5948_s17, %s4194_s18  ;;  %s840_s8 = scalar_lea.vmem [#allocation3], %s5275_s25 }
  0x44   : > { %s5950_s28 = sld [smem:[#allocation9_spill]] }
  0x48   : > { %s908_s12 = scalar_lea.vmem %s5949_s30, %s5280_s1 }
  0x4a   : > { %p3984_p0 = scmp.ne.s32.totalorder %s5950_s28, 0 }
  0x4b   : > { %v914_v0 = vld [vmem:[%s844_s4] sm:$0xff] (!%p3984_p0) }
  0x4c   : > { %913 = sbr.rel (%p3984_p0) target bundleno = 83 (0x53), region = 104  ;;  %915 = vst [vmem:[#allocation2] sm:$0xff] (!%p3984_p0), %v914_v0 }
  0x53 PF: > { %v916_v1 = vld [vmem:[#allocation2] sm:$0xff]  ;;  %v5093_v4 = vmov 0.0   ;;  %v4776_v5 = vld [vmem:[%s5297_s15 + $0x8] sm:$0xff]   ;;  %v4778_v7 = vld [vmem:[%s5297_s15 + $0x10] sm:$0xff]   ;;  %vm5094_vm0 = vmmov 0   ;;  %s5951_s4 = sld [smem:[#allocation23_spill]]  ;;  %s5958_s17 = scalar_lea.vmem %s5874_s11, %s5280_s1 }
  0x54   : > { %917 = vadd.xlane.f32.xlu0 %v916_v1  ;;  %v4774_v2 = vld [vmem:[%s5297_s15] sm:$0xff]   ;;  %4380 = vmatprep.subr.bf16.mxu0 %v5093_v4  ;;  %v4777_v6 = vld [vmem:[%s5297_s15 + $0x48] sm:$0xff]   ;;  %v4779_v8 = vld [vmem:[%s5297_s15 + $0x50] sm:$0xff]   ;;  %s5953_s20 = sld [smem:[#allocation24_spill]]  ;;  %vm2291_vm1 = vcmask 261120   ;;  %vm2532_vm2 = vcmask 1043456  }
  0x55   : > { %v4775_v3 = vld [vmem:[%s5297_s15 + $0x40] sm:$0xff]   ;;  %4400 = vmatprep.subr.bf16.mxu1 %v5093_v4  ;;  %4381 = vmatpush3.bf16.msra.mxu0 %v4774_v2  ;;  %v4780_v13 = vld [vmem:[%s5297_s15 + $0x18] sm:$0xff]   ;;  %v4784_v17 = vld [vmem:[%s5297_s15 + $0x28] sm:$0xff]   ;;  %vm2476_vm3 = vcmask 64512   ;;  %s5959_s28 = sld [smem:[#allocation32_spill]]  ;;  %s5963_s30 = sld [smem:[#allocation9_spill]] }
  0x56   : > { %4401 = vmatpush3.bf16.msra.mxu1 %v4775_v3  ;;  %4382 = vmatprep.subr.bf16.mxu0 %v5093_v4  ;;  %v4781_v14 = vld [vmem:[%s5297_s15 + $0x58] sm:$0xff]   ;;  %v4782_v15 = vld [vmem:[%s5297_s15 + $0x20] sm:$0xff]   ;;  %v4785_v18 = vld [vmem:[%s5297_s15 + $0x68] sm:$0xff]  }
  0x57   : > { %4402 = vmatprep.subr.bf16.mxu1 %v5093_v4  ;;  %v4783_v16 = vld [vmem:[%s5297_s15 + $0x60] sm:$0xff]   ;;  %v4786_v19 = vld [vmem:[%s5297_s15 + $0x30] sm:$0xff]   ;;  %v4788_v21 = vld [vmem:[%s5297_s15 + $0x38] sm:$0xff]   ;;  %4396 = vmatprep.mubr.msk.bf16.mxu0 %vm5094_vm0, %v5093_v4 }
  0x58   : > { %v4787_v20 = vld [vmem:[%s5297_s15 + $0x70] sm:$0xff]   ;;  %v4789_v22 = vld [vmem:[%s5297_s15 + $0x78] sm:$0xff]   ;;  %4416 = vmatprep.mubr.msk.bf16.mxu1 %vm5094_vm0, %v5093_v4  ;;  %v4790_v32 = vld [vmem:[%s5297_s15 + $0x80] sm:$0xff]  }
  0x59   : > { %4383 = vmatpush3.bf16.msra.mxu0 %v4776_v5  ;;  %s5952_s2 = scalar_lea.vmem %s5951_s4, %s5280_s1  ;;  %v4791_v33 = vld [vmem:[%s5297_s15 + $0xc0] sm:$0xff]   ;;  %v4792_v35 = vld [vmem:[%s5297_s15 + $0x88] sm:$0xff]   ;;  %v4794_v37 = vld [vmem:[%s5297_s15 + $0x90] sm:$0xff]  }
  0x5a   : > { %4403 = vmatpush3.bf16.msra.mxu1 %v4777_v6  ;;  %4384 = vmatprep.subr.bf16.mxu0 %v5093_v4  ;;  %v3985_v27 = vld [vmem:[%s5952_s2] ss:$0 sm:$0xff]  ;;  %s5954_s19 = scalar_lea.vmem %s5953_s20, %s5280_s1  ;;  %v4793_v36 = vld [vmem:[%s5297_s15 + $0xc8] sm:$0xff]   ;;  %v4795_v38 = vld [vmem:[%s5297_s15 + $0xd0] sm:$0xff]  }
  0x5b   : > { %4404 = vmatprep.subr.bf16.mxu1 %v5093_v4  ;;  %v3986_v29 = vld [vmem:[%s5954_s19] ss:$0 sm:$0xff]  ;;  %v4796_v39 = vld [vmem:[%s5297_s15 + $0x98] sm:$0xff]   ;;  %v4800_v43 = vld [vmem:[%s5297_s15 + $0xa8] sm:$0xff]   ;;  %p4187_p1 = scmp.ne.s32.totalorder %s5963_s30, 1 }
  0x5c   : > { %v4797_v40 = vld [vmem:[%s5297_s15 + $0xd8] sm:$0xff]   ;;  %v4798_v41 = vld [vmem:[%s5297_s15 + $0xa0] sm:$0xff]   ;;  %v4801_v44 = vld [vmem:[%s5297_s15 + $0xe8] sm:$0xff]   ;;  %s5964_s3 = sld [smem:[#allocation36_spill]] (!%p4187_p1) }
  0x5d   : > { %4385 = vmatpush3.bf16.msra.mxu0 %v4778_v7  ;;  %v4799_v42 = vld [vmem:[%s5297_s15 + $0xe0] sm:$0xff]   ;;  %v4802_v45 = vld [vmem:[%s5297_s15 + $0xb0] sm:$0xff]   ;;  %v4804_v47 = vld [vmem:[%s5297_s15 + $0xb8] sm:$0xff]  }
  0x5e   : > { %4405 = vmatpush3.bf16.msra.mxu1 %v4779_v8  ;;  %4386 = vmatprep.subr.bf16.mxu0 %v5093_v4  ;;  %v4803_v46 = vld [vmem:[%s5297_s15 + $0xf0] sm:$0xff]   ;;  %v4805_v48 = vld [vmem:[%s5297_s15 + $0xf8] sm:$0xff]   ;;  %v4806_v49 = vld [vmem:[%s5311_s26] sm:$0xff]   ;;  %s5955_s15 = sld [smem:[#allocation19_spill]] }
  0x5f   : > { %4406 = vmatprep.subr.bf16.mxu1 %v5093_v4  ;;  %v4807_v50 = vld [vmem:[%s5311_s26 + $0x40] sm:$0xff]   ;;  %v4808_v51 = vld [vmem:[%s5311_s26 + $0x8] sm:$0xff]   ;;  %v4810_v53 = vld [vmem:[%s5311_s26 + $0x10] sm:$0xff]  }
  0x60   : > { %v4809_v52 = vld [vmem:[%s5311_s26 + $0x48] sm:$0xff]   ;;  %v4811_v54 = vld [vmem:[%s5311_s26 + $0x50] sm:$0xff]   ;;  %v4812_v55 = vld [vmem:[%s5311_s26 + $0x18] sm:$0xff]  }
  0x61   : > { %4387 = vmatpush3.bf16.msra.mxu0 %v4780_v13  ;;  %v4813_v56 = vld [vmem:[%s5311_s26 + $0x58] sm:$0xff]   ;;  %v4814_v57 = vld [vmem:[%s5311_s26 + $0x20] sm:$0xff]   ;;  %v4816_v59 = vld [vmem:[%s5311_s26 + $0x28] sm:$0xff]  }
  0x62   : > { %4407 = vmatpush3.bf16.msra.mxu1 %v4781_v14  ;;  %4388 = vmatprep.subr.bf16.mxu0 %v5093_v4  ;;  %v4815_v58 = vld [vmem:[%s5311_s26 + $0x60] sm:$0xff]   ;;  %v4817_v60 = vld [vmem:[%s5311_s26 + $0x68] sm:$0xff]   ;;  %v4818_v61 = vld [vmem:[%s5311_s26 + $0x30] sm:$0xff]  }
  0x63   : > { %4408 = vmatprep.subr.bf16.mxu1 %v5093_v4  ;;  %v4819_v62 = vld [vmem:[%s5311_s26 + $0x70] sm:$0xff]   ;;  %v4820_v63 = vld [vmem:[%s5311_s26 + $0x38] sm:$0xff]   ;;  %v4823_v2 = vld [vmem:[%s5311_s26 + $0xc0] sm:$0xff]  }
  0x64   : > { %v4821_v0 = vld [vmem:[%s5311_s26 + $0x78] sm:$0xff]   ;;  %v4824_v3 = vld [vmem:[%s5311_s26 + $0x88] sm:$0xff]   ;;  %v4826_v6 = vld [vmem:[%s5311_s26 + $0x90] sm:$0xff]  }
  0x65   : > { %4389 = vmatpush3.bf16.msra.mxu0 %v4782_v15  ;;  %v4825_v5 = vld [vmem:[%s5311_s26 + $0xc8] sm:$0xff]   ;;  %v4827_v7 = vld [vmem:[%s5311_s26 + $0xd0] sm:$0xff]   ;;  %v4828_v8 = vld [vmem:[%s5311_s26 + $0x98] sm:$0xff]  }
  0x66   : > { %4409 = vmatpush3.bf16.msra.mxu1 %v4783_v16  ;;  %4390 = vmatprep.subr.bf16.mxu0 %v5093_v4  ;;  %v4833_v13 = vld [vmem:[%s5311_s26 + $0xe8] sm:$0xff]   ;;  %v4834_v14 = vld [vmem:[%s5311_s26 + $0xb0] sm:$0xff]   ;;  %v4836_v16 = vld [vmem:[%s5311_s26 + $0xb8] sm:$0xff]  }
  0x67   : > { %4410 = vmatprep.subr.bf16.mxu1 %v5093_v4  ;;  %v4835_v15 = vld [vmem:[%s5311_s26 + $0xf0] sm:$0xff]  }
  0x69   : > { %4391 = vmatpush3.bf16.msra.mxu0 %v4784_v17  ;;  %v4837_v17 = vld [vmem:[%s5311_s26 + $0xf8] sm:$0xff]  }
  0x6a   : > { %4411 = vmatpush3.bf16.msra.mxu1 %v4785_v18  ;;  %4392 = vmatprep.subr.bf16.mxu0 %v5093_v4  ;;  %v4838_v18 = vld [vmem:[%s5322_s21] sm:$0xff]  }
  0x6b   : > { %4412 = vmatprep.subr.bf16.mxu1 %v5093_v4 }
  0x6d   : > { %4393 = vmatpush3.bf16.msra.mxu0 %v4786_v19  ;;  %v4839_v19 = vld [vmem:[%s5322_s21 + $0x40] sm:$0xff]  }
  0x6e   : > { %4413 = vmatpush3.bf16.msra.mxu1 %v4787_v20  ;;  %4394 = vmatprep.subr.bf16.mxu0 %v5093_v4  ;;  %v4840_v20 = vld [vmem:[%s5322_s21 + $0x8] sm:$0xff]  }
  0x6f   : > { %4414 = vmatprep.subr.bf16.mxu1 %v5093_v4 }
  0x71   : > { %4395 = vmatpush3.bf16.msra.mxu0 %v4788_v21  ;;  %v4841_v21 = vld [vmem:[%s5322_s21 + $0x48] sm:$0xff]  }
  0x72   : > { %4415 = vmatpush3.bf16.msra.mxu1 %v4789_v22  ;;  %4420 = vmatprep.subr.bf16.mxu0 %v5093_v4  ;;  %v4842_v22 = vld [vmem:[%s5322_s21 + $0x10] sm:$0xff]  }
  0x73   : > { %4440 = vmatprep.subr.bf16.mxu1 %v5093_v4 }
  0xe1   : > { %v918_v9 = vpop.xlane.xlu0 %917 }
  0xe2   : > { %v920_v10 = vmul.f32 0.0078125, %v918_v9  ;;  %v4829_v9 = vld [vmem:[%s5311_s26 + $0xd8] sm:$0xff]  }
  0xe4   : > { %v921_v11 = vsub.f32 %v916_v1, %v920_v10  ;;  %v4822_v1 = vld [vmem:[%s5311_s26 + $0x80] sm:$0xff]  }
  0xe5   : > { %v4830_v10 = vld [vmem:[%s5311_s26 + $0xa0] sm:$0xff]  }
  0xe6   : > { %v922_v12 = vmul.f32 %v921_v11, %v921_v11 }
  0xe8   : > { %923 = vadd.xlane.f32.xlu0 %v922_v12  ;;  %v4832_v12 = vld [vmem:[%s5311_s26 + $0xa8] sm:$0xff]  }
 0x175   : > { %v924_v23 = vpop.xlane.xlu0 %923 }
 0x176   : > { %v925_v24 = vmul.f32 0.0078125, %v924_v23  ;;  %v4843_v23 = vld [vmem:[%s5322_s21 + $0x50] sm:$0xff]  }
 0x178   : > { %v926_v25 = vadd.f32 1e-05, %v925_v24  ;;  %v4844_v24 = vld [vmem:[%s5322_s21 + $0x18] sm:$0xff]  }
 0x17a   : > { %4958 = vrsqrt.f32 %v926_v25  ;;  %v4845_v25 = vld [vmem:[%s5322_s21 + $0x58] sm:$0xff]  }
 0x184   : > { %v4959_v26 = vpop.eup %4958 }
 0x185   : > { %v928_v28 = vmul.f32 %v4959_v26, %v921_v11  ;;  %v4831_v11 = vld [vmem:[%s5311_s26 + $0xe0] sm:$0xff]  }
 0x186   : > { %v4846_v26 = vld [vmem:[%s5322_s21 + $0x20] sm:$0xff]  }
 0x187   : > { %v936_v30 = vmul.f32 %v3985_v27, %v928_v28  ;;  %v4847_v27 = vld [vmem:[%s5322_s21 + $0x60] sm:$0xff]   ;;  %v4848_v28 = vld [vmem:[%s5322_s21 + $0x28] sm:$0xff]  }
 0x189   : > { %v944_v31 = vadd.f32 %v3986_v29, %v936_v30  ;;  %v4849_v29 = vld [vmem:[%s5322_s21 + $0x68] sm:$0xff]   ;;  %v4850_v30 = vld [vmem:[%s5322_s21 + $0x30] sm:$0xff]  }
 0x18b   : > { %v5418_v34 = vpack.c.bf16 %v944_v31, %v944_v31  ;;  %v4851_v31 = vld [vmem:[%s5322_s21 + $0x70] sm:$0xff]  }
 0x18d   : > { %4397 = vmatmul.mubr.bf16.vlgmr.msra.gmra.mrb[0].mxu0 %v5418_v34  ;;  %4417 = vmatmul.mubr.bf16.vlgmr.msra.gmra.mrb[0].mxu1 %v5418_v34 }
 0x18e   : > { %4421 = vmatpush3.bf16.msra.mxu0 %v4790_v32  ;;  %4441 = vmatpush3.bf16.msra.mxu1 %v4791_v33  ;;  %v4852_v32 = vld [vmem:[%s5322_s21 + $0x38] sm:$0xff]  }
 0x18f   : > { %4422 = vmatprep.subr.bf16.mxu0 %v5093_v4  ;;  %4442 = vmatprep.subr.bf16.mxu1 %v5093_v4  ;;  %v4853_v33 = vld [vmem:[%s5322_s21 + $0x78] sm:$0xff]  }
 0x190   : > { %4436 = vmatprep.mubr.msk.bf16.mxu0 %vm5094_vm0, %v5093_v4  ;;  %4456 = vmatprep.mubr.msk.bf16.mxu1 %vm5094_vm0, %v5093_v4 }
 0x192   : > { %4423 = vmatpush3.bf16.msra.mxu0 %v4792_v35  ;;  %4443 = vmatpush3.bf16.msra.mxu1 %v4793_v36  ;;  %v4854_v35 = vld [vmem:[%s5322_s21 + $0x80] sm:$0xff]  }
 0x193   : > { %4424 = vmatprep.subr.bf16.mxu0 %v5093_v4  ;;  %4444 = vmatprep.subr.bf16.mxu1 %v5093_v4  ;;  %v4855_v36 = vld [vmem:[%s5322_s21 + $0xc0] sm:$0xff]  }
 0x196   : > { %4425 = vmatpush3.bf16.msra.mxu0 %v4794_v37  ;;  %4445 = vmatpush3.bf16.msra.mxu1 %v4795_v38  ;;  %v4856_v37 = vld [vmem:[%s5322_s21 + $0x88] sm:$0xff]  }
 0x197   : > { %4426 = vmatprep.subr.bf16.mxu0 %v5093_v4  ;;  %4446 = vmatprep.subr.bf16.mxu1 %v5093_v4  ;;  %v4857_v38 = vld [vmem:[%s5322_s21 + $0xc8] sm:$0xff]  }
 0x19a   : > { %4427 = vmatpush3.bf16.msra.mxu0 %v4796_v39  ;;  %4447 = vmatpush3.bf16.msra.mxu1 %v4797_v40  ;;  %v4858_v39 = vld [vmem:[%s5322_s21 + $0x90] sm:$0xff]  }
 0x19b   : > { %4428 = vmatprep.subr.bf16.mxu0 %v5093_v4  ;;  %4448 = vmatprep.subr.bf16.mxu1 %v5093_v4  ;;  %v4859_v40 = vld [vmem:[%s5322_s21 + $0xd0] sm:$0xff]  }
 0x19e   : > { %4429 = vmatpush3.bf16.msra.mxu0 %v4798_v41  ;;  %4449 = vmatpush3.bf16.msra.mxu1 %v4799_v42  ;;  %v4860_v41 = vld [vmem:[%s5322_s21 + $0x98] sm:$0xff]  }
 0x19f   : > { %4430 = vmatprep.subr.bf16.mxu0 %v5093_v4  ;;  %4450 = vmatprep.subr.bf16.mxu1 %v5093_v4  ;;  %v4861_v42 = vld [vmem:[%s5322_s21 + $0xd8] sm:$0xff]  }
 0x1a2   : > { %4431 = vmatpush3.bf16.msra.mxu0 %v4800_v43  ;;  %4451 = vmatpush3.bf16.msra.mxu1 %v4801_v44  ;;  %v4862_v43 = vld [vmem:[%s5322_s21 + $0xa0] sm:$0xff]  }
 0x1a3   : > { %4432 = vmatprep.subr.bf16.mxu0 %v5093_v4  ;;  %4452 = vmatprep.subr.bf16.mxu1 %v5093_v4  ;;  %v4863_v44 = vld [vmem:[%s5322_s21 + $0xe0] sm:$0xff]  }
 0x1a6   : > { %4433 = vmatpush3.bf16.msra.mxu0 %v4802_v45  ;;  %4453 = vmatpush3.bf16.msra.mxu1 %v4803_v46  ;;  %v4864_v45 = vld [vmem:[%s5322_s21 + $0xa8] sm:$0xff]  }
 0x1a7   : > { %4434 = vmatprep.subr.bf16.mxu0 %v5093_v4  ;;  %4454 = vmatprep.subr.bf16.mxu1 %v5093_v4  ;;  %v4865_v46 = vld [vmem:[%s5322_s21 + $0xe8] sm:$0xff]  }
 0x1aa   : > { %4435 = vmatpush3.bf16.msra.mxu0 %v4804_v47  ;;  %4455 = vmatpush3.bf16.msra.mxu1 %v4805_v48  ;;  %v4866_v47 = vld [vmem:[%s5322_s21 + $0xb0] sm:$0xff]  }
 0x1ab   : > { %4460 = vmatprep.subr.bf16.mxu0 %v5093_v4  ;;  %4480 = vmatprep.subr.bf16.mxu1 %v5093_v4  ;;  %v4867_v48 = vld [vmem:[%s5322_s21 + $0xf0] sm:$0xff]  }
 0x1ad   : > { %4437 = vmatmul.mubr.bf16.vlgmr.msra.gmra.mrb[4].mxu0 %v5418_v34  ;;  %4457 = vmatmul.mubr.bf16.vlgmr.msra.gmra.mrb[4].mxu1 %v5418_v34 }
 0x1ae   : > { %4461 = vmatpush3.bf16.msra.mxu0 %v4806_v49  ;;  %4481 = vmatpush3.bf16.msra.mxu1 %v4807_v50  ;;  %v4868_v49 = vld [vmem:[%s5322_s21 + $0xb8] sm:$0xff]  }
 0x1af   : > { %4462 = vmatprep.subr.bf16.mxu0 %v5093_v4  ;;  %4482 = vmatprep.subr.bf16.mxu1 %v5093_v4  ;;  %v4869_v50 = vld [vmem:[%s5322_s21 + $0xf8] sm:$0xff]   ;;  %s5957_s21 = sld [smem:[#allocation20_spill]] }
 0x1b0   : > { %4476 = vmatprep.mubr.msk.bf16.mxu0 %vm5094_vm0, %v5093_v4  ;;  %4496 = vmatprep.mubr.msk.bf16.mxu1 %vm5094_vm0, %v5093_v4 }
 0x1b2   : > { %4463 = vmatpush3.bf16.msra.mxu0 %v4808_v51  ;;  %4483 = vmatpush3.bf16.msra.mxu1 %v4809_v52 }
 0x1b3   : > { %4464 = vmatprep.subr.bf16.mxu0 %v5093_v4  ;;  %4484 = vmatprep.subr.bf16.mxu1 %v5093_v4 }
 0x1b6   : > { %4465 = vmatpush3.bf16.msra.mxu0 %v4810_v53  ;;  %4485 = vmatpush3.bf16.msra.mxu1 %v4811_v54 }
 0x1b7   : > { %4466 = vmatprep.subr.bf16.mxu0 %v5093_v4  ;;  %4486 = vmatprep.subr.bf16.mxu1 %v5093_v4 }
 0x1ba   : > { %4467 = vmatpush3.bf16.msra.mxu0 %v4812_v55  ;;  %4487 = vmatpush3.bf16.msra.mxu1 %v4813_v56 }
 0x1bb   : > { %4468 = vmatprep.subr.bf16.mxu0 %v5093_v4  ;;  %4488 = vmatprep.subr.bf16.mxu1 %v5093_v4 }
 0x1be   : > { %4469 = vmatpush3.bf16.msra.mxu0 %v4814_v57  ;;  %4489 = vmatpush3.bf16.msra.mxu1 %v4815_v58 }
 0x1bf   : > { %4470 = vmatprep.subr.bf16.mxu0 %v5093_v4  ;;  %4490 = vmatprep.subr.bf16.mxu1 %v5093_v4 }
 0x1c2   : > { %4471 = vmatpush3.bf16.msra.mxu0 %v4816_v59  ;;  %4491 = vmatpush3.bf16.msra.mxu1 %v4817_v60 }
 0x1c3   : > { %4472 = vmatprep.subr.bf16.mxu0 %v5093_v4  ;;  %4492 = vmatprep.subr.bf16.mxu1 %v5093_v4 }
 0x1c6   : > { %4473 = vmatpush3.bf16.msra.mxu0 %v4818_v61  ;;  %4493 = vmatpush3.bf16.msra.mxu1 %v4819_v62 }
 0x1c7   : > { %4474 = vmatprep.subr.bf16.mxu0 %v5093_v4  ;;  %4494 = vmatprep.subr.bf16.mxu1 %v5093_v4 }
 0x1ca   : > { %4475 = vmatpush3.bf16.msra.mxu0 %v4820_v63  ;;  %4495 = vmatpush3.bf16.msra.mxu1 %v4821_v0 }
 0x1cb   : > { %4500 = vmatprep.subr.bf16.mxu0 %v5093_v4  ;;  %4520 = vmatprep.subr.bf16.mxu1 %v5093_v4 }
 0x1cd   : > { %4477 = vmatmul.mubr.bf16.vlgmr.msra.gmra.mrb[8].mxu0 %v5418_v34  ;;  %4497 = vmatmul.mubr.bf16.vlgmr.msra.gmra.mrb[8].mxu1 %v5418_v34 }
 0x1ce   : > { %4501 = vmatpush3.bf16.msra.mxu0 %v4822_v1  ;;  %4521 = vmatpush3.bf16.msra.mxu1 %v4823_v2  ;;  %v4023_v2 = vld [vmem:[%s5317_s24] ss:$0 sm:$0xff] }
 0x1cf   : > { %4502 = vmatprep.subr.bf16.mxu0 %v5093_v4  ;;  %4522 = vmatprep.subr.bf16.mxu1 %v5093_v4 }
 0x1d0   : > { %4516 = vmatprep.mubr.msk.bf16.mxu0 %vm5094_vm0, %v5093_v4  ;;  %4536 = vmatprep.mubr.msk.bf16.mxu1 %vm5094_vm0, %v5093_v4 }
 0x1d2   : > { %4503 = vmatpush3.bf16.msra.mxu0 %v4824_v3  ;;  %4523 = vmatpush3.bf16.msra.mxu1 %v4825_v5  ;;  %v4024_v3 = vld [vmem:[%s5317_s24 + $0x1] ss:$0 sm:$0xff]  ;;  %v3987_v5 = vld [vmem:[%s5306_s23] ss:$0 sm:$0xff] }
 0x1d3   : > { %4504 = vmatprep.subr.bf16.mxu0 %v5093_v4  ;;  %4524 = vmatprep.subr.bf16.mxu1 %v5093_v4 }
 0x1d6   : > { %4505 = vmatpush3.bf16.msra.mxu0 %v4826_v6  ;;  %4525 = vmatpush3.bf16.msra.mxu1 %v4827_v7  ;;  %v3988_v6 = vld [vmem:[%s5306_s23 + $0x1] ss:$0 sm:$0xff] }
 0x1d7   : > { %4506 = vmatprep.subr.bf16.mxu0 %v5093_v4  ;;  %4526 = vmatprep.subr.bf16.mxu1 %v5093_v4 }
 0x1da   : > { %4507 = vmatpush3.bf16.msra.mxu0 %v4828_v8  ;;  %4527 = vmatpush3.bf16.msra.mxu1 %v4829_v9 }
 0x1db   : > { %4508 = vmatprep.subr.bf16.mxu0 %v5093_v4  ;;  %4528 = vmatprep.subr.bf16.mxu1 %v5093_v4 }
 0x1de   : > { %4509 = vmatpush3.bf16.msra.mxu0 %v4830_v10  ;;  %4529 = vmatpush3.bf16.msra.mxu1 %v4831_v11 }
 0x1df   : > { %4510 = vmatprep.subr.bf16.mxu0 %v5093_v4  ;;  %4530 = vmatprep.subr.bf16.mxu1 %v5093_v4 }
 0x1e2   : > { %4511 = vmatpush3.bf16.msra.mxu0 %v4832_v12  ;;  %4531 = vmatpush3.bf16.msra.mxu1 %v4833_v13 }
 0x1e3   : > { %4512 = vmatprep.subr.bf16.mxu0 %v5093_v4  ;;  %4532 = vmatprep.subr.bf16.mxu1 %v5093_v4 }
 0x1e6   : > { %4513 = vmatpush3.bf16.msra.mxu0 %v4834_v14  ;;  %4533 = vmatpush3.bf16.msra.mxu1 %v4835_v15 }
 0x1e7   : > { %4514 = vmatprep.subr.bf16.mxu0 %v5093_v4  ;;  %4534 = vmatprep.subr.bf16.mxu1 %v5093_v4 }
 0x1ea   : > { %4515 = vmatpush3.bf16.msra.mxu0 %v4836_v16  ;;  %4535 = vmatpush3.bf16.msra.mxu1 %v4837_v17 }
 0x1eb   : > { %4540 = vmatprep.subr.bf16.mxu0 %v5093_v4  ;;  %4560 = vmatprep.subr.bf16.mxu1 %v5093_v4 }
 0x1ed   : > { %4517 = vmatmul.mubr.bf16.vlgmr.msra.gmra.mrb[12].mxu0 %v5418_v34  ;;  %4537 = vmatmul.mubr.bf16.vlgmr.msra.gmra.mrb[12].mxu1 %v5418_v34 }
 0x1ee   : > { %4541 = vmatpush3.bf16.msra.mxu0 %v4838_v18  ;;  %4561 = vmatpush3.bf16.msra.mxu1 %v4839_v19 }
 0x1ef   : > { %4542 = vmatprep.subr.bf16.mxu0 %v5093_v4  ;;  %4562 = vmatprep.subr.bf16.mxu1 %v5093_v4 }
 0x1f0   : > { %4556 = vmatprep.mubr.msk.bf16.mxu0 %vm5094_vm0, %v5093_v4  ;;  %4576 = vmatprep.mubr.msk.bf16.mxu1 %vm5094_vm0, %v5093_v4 }
 0x1f2   : > { %4543 = vmatpush3.bf16.msra.mxu0 %v4840_v20  ;;  %4563 = vmatpush3.bf16.msra.mxu1 %v4841_v21 }
 0x1f3   : > { %4544 = vmatprep.subr.bf16.mxu0 %v5093_v4  ;;  %4564 = vmatprep.subr.bf16.mxu1 %v5093_v4 }
 0x1f6   : > { %4545 = vmatpush3.bf16.msra.mxu0 %v4842_v22  ;;  %4565 = vmatpush3.bf16.msra.mxu1 %v4843_v23 }
 0x1f7   : > { %4546 = vmatprep.subr.bf16.mxu0 %v5093_v4  ;;  %4566 = vmatprep.subr.bf16.mxu1 %v5093_v4 }
 0x1fa   : > { %4547 = vmatpush3.bf16.msra.mxu0 %v4844_v24  ;;  %4567 = vmatpush3.bf16.msra.mxu1 %v4845_v25 }
 0x1fb   : > { %4548 = vmatprep.subr.bf16.mxu0 %v5093_v4  ;;  %4568 = vmatprep.subr.bf16.mxu1 %v5093_v4 }
 0x1fe   : > { %4549 = vmatpush3.bf16.msra.mxu0 %v4846_v26  ;;  %4569 = vmatpush3.bf16.msra.mxu1 %v4847_v27  ;;  %v4025_v27 = vld [vmem:[%s5317_s24 + $0x2] ss:$0 sm:$0xff] }
 0x1ff   : > { %4550 = vmatprep.subr.bf16.mxu0 %v5093_v4  ;;  %4570 = vmatprep.subr.bf16.mxu1 %v5093_v4 }
 0x202   : > { %4551 = vmatpush3.bf16.msra.mxu0 %v4848_v28  ;;  %4571 = vmatpush3.bf16.msra.mxu1 %v4849_v29  ;;  %v4026_v28 = vld [vmem:[%s5317_s24 + $0x3] ss:$0 sm:$0xff]  ;;  %v3989_v29 = vld [vmem:[%s5306_s23 + $0x2] ss:$0 sm:$0xff]  ;;  %s5956_s24 = sld [smem:[#allocation22_spill]] }
 0x203   : > { %4552 = vmatprep.subr.bf16.mxu0 %v5093_v4  ;;  %4572 = vmatprep.subr.bf16.mxu1 %v5093_v4 }
 0x206   : > { %4553 = vmatpush3.bf16.msra.mxu0 %v4850_v30  ;;  %4573 = vmatpush3.bf16.msra.mxu1 %v4851_v31  ;;  %v3990_v30 = vld [vmem:[%s5306_s23 + $0x3] ss:$0 sm:$0xff] }
 0x207   : > { %4554 = vmatprep.subr.bf16.mxu0 %v5093_v4  ;;  %4574 = vmatprep.subr.bf16.mxu1 %v5093_v4 }
 0x20a   : > { %4555 = vmatpush3.bf16.msra.mxu0 %v4852_v32  ;;  %4575 = vmatpush3.bf16.msra.mxu1 %v4853_v33 }
 0x20b   : > { %4580 = vmatprep.subr.bf16.mxu0 %v5093_v4  ;;  %4600 = vmatprep.subr.bf16.mxu1 %v5093_v4 }
 0x20d   : > { %4557 = vmatmul.mubr.bf16.vlgmr.msra.gmra.mrb[16].mxu0 %v5418_v34  ;;  %4577 = vmatmul.mubr.bf16.vlgmr.msra.gmra.mrb[16].mxu1 %v5418_v34 }
 0x20e   : > { %4581 = vmatpush3.bf16.msra.mxu0 %v4854_v35  ;;  %4601 = vmatpush3.bf16.msra.mxu1 %v4855_v36 }
 0x20f   : > { %4582 = vmatprep.subr.bf16.mxu0 %v5093_v4  ;;  %4602 = vmatprep.subr.bf16.mxu1 %v5093_v4 }
 0x210   : > { %4596 = vmatprep.mubr.msk.bf16.mxu0 %vm5094_vm0, %v5093_v4  ;;  %4616 = vmatprep.mubr.msk.bf16.mxu1 %vm5094_vm0, %v5093_v4 }
 0x212   : > { %4583 = vmatpush3.bf16.msra.mxu0 %v4856_v37  ;;  %4603 = vmatpush3.bf16.msra.mxu1 %v4857_v38 }
 0x213   : > { %4584 = vmatprep.subr.bf16.mxu0 %v5093_v4  ;;  %4604 = vmatprep.subr.bf16.mxu1 %v5093_v4 }
 0x216   : > { %4585 = vmatpush3.bf16.msra.mxu0 %v4858_v39  ;;  %4605 = vmatpush3.bf16.msra.mxu1 %v4859_v40 }
 0x217   : > { %4586 = vmatprep.subr.bf16.mxu0 %v5093_v4  ;;  %4606 = vmatprep.subr.bf16.mxu1 %v5093_v4 }
 0x21a   : > { %4587 = vmatpush3.bf16.msra.mxu0 %v4860_v41  ;;  %4607 = vmatpush3.bf16.msra.mxu1 %v4861_v42 }
 0x21b   : > { %4588 = vmatprep.subr.bf16.mxu0 %v5093_v4  ;;  %4608 = vmatprep.subr.bf16.mxu1 %v5093_v4 }
 0x21e   : > { %4589 = vmatpush3.bf16.msra.mxu0 %v4862_v43  ;;  %4609 = vmatpush3.bf16.msra.mxu1 %v4863_v44 }
 0x21f   : > { %4590 = vmatprep.subr.bf16.mxu0 %v5093_v4  ;;  %4610 = vmatprep.subr.bf16.mxu1 %v5093_v4 }
 0x222   : > { %4591 = vmatpush3.bf16.msra.mxu0 %v4864_v45  ;;  %4611 = vmatpush3.bf16.msra.mxu1 %v4865_v46 }
 0x223   : > { %4592 = vmatprep.subr.bf16.mxu0 %v5093_v4  ;;  %4612 = vmatprep.subr.bf16.mxu1 %v5093_v4 }
 0x226   : > { %4593 = vmatpush3.bf16.msra.mxu0 %v4866_v47  ;;  %4613 = vmatpush3.bf16.msra.mxu1 %v4867_v48 }
 0x227   : > { %4594 = vmatprep.subr.bf16.mxu0 %v5093_v4  ;;  %4614 = vmatprep.subr.bf16.mxu1 %v5093_v4 }
 0x22a   : > { %4595 = vmatpush3.bf16.msra.mxu0 %v4868_v49  ;;  %4615 = vmatpush3.bf16.msra.mxu1 %v4869_v50 }
 0x22b   : > { %4620 = vmatprep.subr.bf16.mxu0 %v5093_v4  ;;  %4626 = vmatprep.subr.bf16.mxu1 %v5093_v4 }
 0x22d   : > { %4597 = vmatmul.mubr.bf16.vlgmr.msra.gmra.mrb[20].mxu0 %v5418_v34  ;;  %4617 = vmatmul.mubr.bf16.vlgmr.msra.gmra.mrb[20].mxu1 %v5418_v34 }
 0x22e   : > { %4622 = vmatprep.mubr.msk.bf16.mxu0 %vm5094_vm0, %v5093_v4  ;;  %4628 = vmatprep.mubr.msk.bf16.mxu1 %vm5094_vm0, %v5093_v4 }
 0x260   : > { %v1120_v51 = vpop.f32.mrb[0].mxu0  ;;  %v1208_v52 = vpop.f32.mrb[0].mxu1 }
 0x261   : > { %v4398_v53 = vpop.f32.mrb[1].mxu0  ;;  %v4418_v54 = vpop.f32.mrb[1].mxu1  ;;  %v1121_v15 = vadd.f32 %v3987_v5, %v1120_v51  ;;  %v1209_v16 = vadd.f32 %v3988_v6, %v1208_v52  ;;  %v4059_v52 = vld [vmem:[%s5955_s15] ss:$0 sm:$0xff]  ;;  %v4062_v5 = vld [vmem:[%s5955_s15 + $0x3] ss:$0 sm:$0xff] }
 0x262   : > { %v1123_v55 = vpop.f32.mrb[2].mxu0  ;;  %v1211_v56 = vpop.f32.mrb[2].mxu1  ;;  %v4060_v53 = vld [vmem:[%s5955_s15 + $0x1] ss:$0 sm:$0xff] }
 0x263   : > { %v4399_v57 = vpop.f32.mrb[3].mxu0  ;;  %v4419_v58 = vpop.f32.mrb[3].mxu1  ;;  %v2278_v23 = vmul.f32 0.17677669, %v1121_v15  ;;  %v2279_v24 = vmul.f32 0.17677669, %v1209_v16 }
 0x265   : > { %v2282_v25 = vpack.c.bf16 %v2278_v23, %v2278_v23  ;;  %v2283_v26 = vpack.c.bf16 %v2279_v24, %v2279_v24 }
 0x280   : > { %v1296_v59 = vpop.f32.mrb[4].mxu0  ;;  %v1384_v34 = vpop.f32.mrb[4].mxu1 }
 0x281   : > { %v4438_v60 = vpop.f32.mrb[5].mxu0  ;;  %v4458_v61 = vpop.f32.mrb[5].mxu1  ;;  %v1297_v40 = vadd.f32 %v3989_v29, %v1296_v59  ;;  %v1385_v41 = vadd.f32 %v3990_v30, %v1384_v34 }
 0x282   : > { %v1299_v62 = vpop.f32.mrb[6].mxu0  ;;  %v1387_v63 = vpop.f32.mrb[6].mxu1 }
 0x283   : > { %v4439_v0 = vpop.f32.mrb[7].mxu0  ;;  %v4459_v1 = vpop.f32.mrb[7].mxu1  ;;  %v2280_v48 = vmul.f32 0.17677669, %v1297_v40  ;;  %v2281_v49 = vmul.f32 0.17677669, %v1385_v41 }
 0x285   : > { %v2284_v50 = vpack.c.bf16 %v2280_v48, %v2280_v48  ;;  %v2285_v51 = vpack.c.bf16 %v2281_v49, %v2281_v49 }
 0x2a0   : > { %v1564_v7 = vpop.f32.mrb[8].mxu0  ;;  %v1652_v8 = vpop.f32.mrb[8].mxu1 }
 0x2a1   : > { %v1565_v9 = vadd.f32 %v4023_v2, %v1564_v7  ;;  %v1653_v10 = vadd.f32 %v4024_v3, %v1652_v8  ;;  %v4478_v11 = vpop.f32.mrb[9].mxu0  ;;  %v4498_v12 = vpop.f32.mrb[9].mxu1  ;;  %v4061_v3 = vld [vmem:[%s5955_s15 + $0x2] ss:$0 sm:$0xff]  ;;  %s5965_s15 = sld [smem:[#allocation37_spill]] (!%p4187_p1) }
 0x2a2   : > { %v1567_v13 = vpop.f32.mrb[10].mxu0  ;;  %v1655_v14 = vpop.f32.mrb[10].mxu1 }
 0x2a3   : > { %v2286_v17 = vpack.c.bf16 %v1565_v9, %v1565_v9  ;;  %v2287_v18 = vpack.c.bf16 %v1653_v10, %v1653_v10  ;;  %v4479_v19 = vpop.f32.mrb[11].mxu0  ;;  %v4499_v20 = vpop.f32.mrb[11].mxu1 }
 0x2a4   : > { %v2290_v20 = vld [vmem:[%s5956_s24] sm:$0xff] }
 0x2a5   : > { %v2296_v21 = vsel %vm2291_vm1, %v2286_v17, 0  ;;  %v2342_v22 = vsel %vm2291_vm1, %v2287_v18, 0 }
 0x2a6   : > { %4621 = vmatpush3.bf16.xpose.msra.mxu0 %v2296_v21  ;;  %4627 = vmatpush3.bf16.xpose.msra.mxu1 %v2342_v22 }
 0x2a7   : > { %4632 = vmatprep.subr.bf16.mxu0 %v5093_v4  ;;  %4638 = vmatprep.subr.bf16.mxu1 %v5093_v4 }
 0x2ad   : > { %4623 = vmatmul.mubr.msk.bf16.vlgmr.msra.gmra.mrb[24].mxu0 %vm2291_vm1, %v2282_v25  ;;  %4629 = vmatmul.mubr.msk.bf16.vlgmr.msra.gmra.mrb[24].mxu1 %vm2291_vm1, %v2283_v26 }
 0x2ae   : > { %4634 = vmatprep.mubr.msk.bf16.mxu0 %vm5094_vm0, %v5093_v4  ;;  %4640 = vmatprep.mubr.msk.bf16.mxu1 %vm5094_vm0, %v5093_v4 }
 0x2c0   : > { %v1740_v31 = vpop.f32.mrb[12].mxu0  ;;  %v1828_v32 = vpop.f32.mrb[12].mxu1 }
 0x2c1   : > { %v1741_v33 = vadd.f32 %v4025_v27, %v1740_v31  ;;  %v1829_v35 = vadd.f32 %v4026_v28, %v1828_v32  ;;  %v4518_v36 = vpop.f32.mrb[13].mxu0  ;;  %v4538_v37 = vpop.f32.mrb[13].mxu1 }
 0x2c2   : > { %v1743_v38 = vpop.f32.mrb[14].mxu0  ;;  %v1831_v39 = vpop.f32.mrb[14].mxu1 }
 0x2c3   : > { %v2288_v42 = vpack.c.bf16 %v1741_v33, %v1741_v33  ;;  %v2289_v43 = vpack.c.bf16 %v1829_v35, %v1829_v35  ;;  %v4519_v44 = vpop.f32.mrb[15].mxu0  ;;  %v4539_v45 = vpop.f32.mrb[15].mxu1 }
 0x2c5   : > { %v2388_v46 = vsel %vm2291_vm1, %v2288_v42, 0  ;;  %v2434_v47 = vsel %vm2291_vm1, %v2289_v43, 0 }
 0x2c6   : > { %4633 = vmatpush3.bf16.xpose.msra.mxu0 %v2388_v46  ;;  %4639 = vmatpush3.bf16.xpose.msra.mxu1 %v2434_v47 }
 0x2c7   : > { %4644 = vmatprep.subr.bf16.mxu0 %v5093_v4  ;;  %4650 = vmatprep.subr.bf16.mxu1 %v5093_v4 }
 0x2cd   : > { %4635 = vmatmul.mubr.msk.bf16.vlgmr.msra.gmra.mrb[28].mxu0 %vm2291_vm1, %v2284_v50  ;;  %4641 = vmatmul.mubr.msk.bf16.vlgmr.msra.gmra.mrb[28].mxu1 %vm2291_vm1, %v2285_v51 }
 0x2ce   : > { %4646 = vmatprep.mubr.msk.bf16.mxu0 %vm5094_vm0, %v5093_v4  ;;  %4652 = vmatprep.mubr.msk.bf16.mxu1 %vm5094_vm0, %v5093_v4 }
 0x2e0   : > { %v2008_v54 = vpop.f32.mrb[16].mxu0  ;;  %v2096_v55 = vpop.f32.mrb[16].mxu1 }
 0x2e1   : > { %v2009_v56 = vadd.f32 %v4059_v52, %v2008_v54  ;;  %v2097_v57 = vadd.f32 %v4060_v53, %v2096_v55  ;;  %v4558_v58 = vpop.f32.mrb[17].mxu0  ;;  %v4578_v59 = vpop.f32.mrb[17].mxu1 }
 0x2e2   : > { %v2011_v34 = vpop.f32.mrb[18].mxu0  ;;  %v2099_v60 = vpop.f32.mrb[18].mxu1 }
 0x2e3   : > { %v2525_v61 = vpack.c.bf16 %v2009_v56, %v2009_v56  ;;  %v2526_v62 = vpack.c.bf16 %v2097_v57, %v2097_v57  ;;  %v4559_v63 = vpop.f32.mrb[19].mxu0  ;;  %v4579_v0 = vpop.f32.mrb[19].mxu1 }
 0x2e5   : > { %v2534_v1 = vsel %vm2532_vm2, %v2525_v61, 0  ;;  %v2580_v2 = vsel %vm2532_vm2, %v2526_v62, 0 }
 0x2e6   : > { %4645 = vmatpush3.bf16.msra.mxu0 %v2534_v1  ;;  %4651 = vmatpush3.bf16.msra.mxu1 %v2580_v2 }
 0x2e7   : > { %4656 = vmatprep.subr.bf16.mxu0 %v5093_v4  ;;  %4662 = vmatprep.subr.bf16.mxu1 %v5093_v4 }
 0x300   : > { %v2184_v6 = vpop.f32.mrb[20].mxu0  ;;  %v2272_v7 = vpop.f32.mrb[20].mxu1 }
 0x301   : > { %v2185_v8 = vadd.f32 %v4061_v3, %v2184_v6  ;;  %v2273_v9 = vadd.f32 %v4062_v5, %v2272_v7  ;;  %v4598_v10 = vpop.f32.mrb[21].mxu0  ;;  %v4618_v11 = vpop.f32.mrb[21].mxu1 }
 0x302   : > { %v2187_v12 = vpop.f32.mrb[22].mxu0  ;;  %v2275_v13 = vpop.f32.mrb[22].mxu1 }
 0x303   : > { %v2527_v14 = vpack.c.bf16 %v2185_v8, %v2185_v8  ;;  %v2528_v15 = vpack.c.bf16 %v2273_v9, %v2273_v9  ;;  %v4599_v16 = vpop.f32.mrb[23].mxu0  ;;  %v4619_v17 = vpop.f32.mrb[23].mxu1 }
 0x304   : > { %v4870_v17 = vld [vmem:[%s5957_s21] sm:$0xff]  }
 0x305   : > { %v5651_v18 = vsel %vm2532_vm2, %v2527_v14, 0  ;;  %v5654_v19 = vsel %vm2532_vm2, %v2528_v15, 0 }
 0x380   : > { %v2332_v21 = vpop.f32.mrb[24].mxu0  ;;  %v2378_v22 = vpop.f32.mrb[24].mxu1 }
 0x381   : > { %v2333_v23 = vadd.f32 %v2332_v21, %v2290_v20  ;;  %v4624_v24 = vpop.f32.mrb[25].mxu0  ;;  %v4630_v25 = vpop.f32.mrb[25].mxu1  ;;  %v2379_v28 = vadd.f32 %v2378_v22, %v2290_v20  ;;  %v4873_v21 = vld [vmem:[%s5957_s21 + $0x18] sm:$0xff]  }
 0x382   : > { %v2335_v26 = vpop.f32.mrb[26].mxu0  ;;  %v2381_v27 = vpop.f32.mrb[26].mxu1 }
 0x383   : > { %v4625_v29 = vpop.f32.mrb[27].mxu0  ;;  %v4631_v30 = vpop.f32.mrb[27].mxu1  ;;  %v2477_v31 = vsel %vm2476_vm3, %v2333_v23, -inf  ;;  %v2480_v32 = vsel %vm2476_vm3, %v2379_v28, -inf }
 0x384   : > { %2478 = vmax.xlane.f32.xlu1 %v2477_v31  ;;  %v4875_v29 = vld [vmem:[%s5957_s21 + $0x30] sm:$0xff]   ;;  %v4876_v30 = vld [vmem:[%s5957_s21 + $0x28] sm:$0xff]  }
 0x388   : > { %2481 = vmax.xlane.f32.xlu1 %v2480_v32 }
 0x3a0   : > { %v2424_v33 = vpop.f32.mrb[28].mxu0  ;;  %v2470_v35 = vpop.f32.mrb[28].mxu1 }
 0x3a1   : > { %v2425_v36 = vadd.f32 %v2424_v33, %v2290_v20  ;;  %v2471_v37 = vadd.f32 %v2470_v35, %v2290_v20  ;;  %v4636_v38 = vpop.f32.mrb[29].mxu0  ;;  %v4642_v39 = vpop.f32.mrb[29].mxu1  ;;  %v4872_v20 = vld [vmem:[%s5957_s21 + $0x10] sm:$0xff]  }
 0x3a2   : > { %v2427_v40 = vpop.f32.mrb[30].mxu0  ;;  %v2473_v41 = vpop.f32.mrb[30].mxu1 }
 0x3a3   : > { %v4637_v42 = vpop.f32.mrb[31].mxu0  ;;  %v4643_v43 = vpop.f32.mrb[31].mxu1  ;;  %v2486_v44 = vsel %vm2476_vm3, %v2471_v37, -inf  ;;  %v2483_v45 = vsel %vm2476_vm3, %v2425_v36, -inf }
 0x3a4   : > { %2487 = vmax.xlane.f32.xlu1 %v2486_v44  ;;  %2484 = vmax.xlane.f32.xlu0 %v2483_v45 }
 0x411   : > { %v2479_v46 = vpop.xlane.xlu1 %2478 }
 0x412   : > { %v2489_v47 = vsub.f32 %v2333_v23, %v2479_v46  ;;  %v4874_v23 = vld [vmem:[%s5957_s21 + $0x20] sm:$0xff]  }
 0x414   : > { %v2493_v48 = vmul.f32 1.442695, %v2489_v47 }
 0x415   : > { %v2482_v49 = vpop.xlane.xlu1 %2481 }
 0x416   : > { %4960 = vpow2.f32 %v2493_v48  ;;  %v2490_v50 = vsub.f32 %v2379_v28, %v2482_v49 }
 0x418   : > { %v2495_v51 = vmul.f32 1.442695, %v2490_v50 }
 0x41a   : > { %4962 = vpow2.f32 %v2495_v51 }
 0x420   : > { %v4961_v52 = vpop.eup %4960 }
 0x421   : > { %v2501_v53 = vsel %vm2476_vm3, %v4961_v52, 0.0 }
 0x422   : > { %2502 = vadd.xlane.f32.xlu0 %v2501_v53 }
 0x424   : > { %v4963_v54 = vpop.eup %4962 }
 0x425   : > { %v2504_v55 = vsel %vm2476_vm3, %v4963_v54, 0.0 }
 0x426   : > { %2505 = vadd.xlane.f32.xlu1 %v2504_v55 }
 0x431   : > { %v2488_v56 = vpop.xlane.xlu1 %2487  ;;  %v2485_v57 = vpop.xlane.xlu0 %2484 }
 0x432   : > { %v2492_v58 = vsub.f32 %v2471_v37, %v2488_v56  ;;  %v2491_v59 = vsub.f32 %v2425_v36, %v2485_v57  ;;  %v4877_v36 = vld [vmem:[%s5957_s21 + $0x38] sm:$0xff]  }
 0x434   : > { %v2499_v34 = vmul.f32 1.442695, %v2492_v58  ;;  %v2497_v60 = vmul.f32 1.442695, %v2491_v59 }
 0x436   : > { %4964 = vpow2.f32 %v2499_v34 }
 0x437   : > { %4966 = vpow2.f32 %v2497_v60  ;;  %v4115_v60 = vld [vmem:[%s5958_s17] ss:$0 sm:$0xff] }
 0x440   : > { %v4965_v61 = vpop.eup %4964 }
 0x441   : > { %v4967_v62 = vpop.eup %4966  ;;  %v2510_v63 = vsel %vm2476_vm3, %v4965_v61, 0.0 }
 0x442   : > { %2511 = vadd.xlane.f32.xlu1 %v2510_v63  ;;  %v2507_v0 = vsel %vm2476_vm3, %v4967_v62, 0.0 }
 0x443   : > { %2508 = vadd.xlane.f32.xlu0 %v2507_v0 }
 0x4af   : > { %v2503_v1 = vpop.xlane.xlu0 %2502 }
 0x4b0   : > { %4968 = vrcp.f32 %v2503_v1 }
 0x4b3   : > { %v2506_v2 = vpop.xlane.xlu1 %2505 }
 0x4b4   : > { %4970 = vrcp.f32 %v2506_v2  ;;  %v4994_v2 = vld [vmem:[#allocation2] sm:$0xff] }
 0x4ba   : > { %v4969_v3 = vpop.eup %4968 }
 0x4bb   : > { %v2517_v5 = vmul.f32 %v4969_v3, %v4961_v52 }
 0x4bd   : > { %v2521_v6 = vpack.c.bf16 %v2517_v5, %v2517_v5  ;;  %v4878_v5 = vld [vmem:[%s5351_s29] ss:$16 sps:$4 sm:$0xff]  }
 0x4be   : > { %v4971_v7 = vpop.eup %4970 }
 0x4bf   : > { %v2518_v8 = vmul.f32 %v4971_v7, %v4963_v54  ;;  %4647 = vmatmul.mubr.msk.bf16.vlgmr.msra.gmra.mrb[32].mxu0 %vm2476_vm3, %v2521_v6  ;;  %v4880_v6 = vld [vmem:[%s5351_s29 + $0x4] ss:$16 sps:$4 sm:$0xff]   ;;  %v4881_v7 = vld [vmem:[%s5351_s29 + $0x8] ss:$16 sps:$4 sm:$0xff]  }
 0x4c0   : > { %4657 = vmatpush3.bf16.msra.mxu0 %v5651_v18  ;;  %4658 = vmatprep.mubr.msk.bf16.mxu0 %vm5094_vm0, %v5093_v4 }
 0x4c1   : > { %v2522_v9 = vpack.c.bf16 %v2518_v8, %v2518_v8  ;;  %4668 = vmatprep.subr.bf16.mxu0 %v5093_v4  ;;  %v4883_v8 = vld [vmem:[%s5351_s29 + $0xc] ss:$16 sps:$4 sm:$0xff]  }
 0x4c3   : > { %4653 = vmatmul.mubr.msk.bf16.vlgmr.msra.gmra.mrb[32].mxu1 %vm2476_vm3, %v2522_v9  ;;  %v4886_v9 = vld [vmem:[%s5351_s29 + $0x24] ss:$16 sps:$4 sm:$0xff]  }
 0x4c4   : > { %4663 = vmatpush3.bf16.msra.mxu1 %v5654_v19  ;;  %4664 = vmatprep.mubr.msk.bf16.mxu1 %vm5094_vm0, %v5093_v4  ;;  %v4871_v19 = vld [vmem:[%s5957_s21 + $0x8] sm:$0xff]  }
 0x4c5   : > { %4676 = vmatprep.subr.bf16.mxu1 %v5093_v4 }
 0x4cf   : > { %v2512_v10 = vpop.xlane.xlu1 %2511 }
 0x4d0   : > { %4972 = vrcp.f32 %v2512_v10  ;;  %v2509_v11 = vpop.xlane.xlu0 %2508  ;;  %v4889_v10 = vld [vmem:[%s5351_s29 + $0x2c] ss:$16 sps:$4 sm:$0xff]  }
 0x4d1   : > { %4974 = vrcp.f32 %v2509_v11  ;;  %v4884_v11 = vld [vmem:[%s5351_s29 + $0x20] ss:$16 sps:$4 sm:$0xff]  }
 0x4da   : > { %v4973_v12 = vpop.eup %4972 }
 0x4db   : > { %v4975_v13 = vpop.eup %4974  ;;  %v2520_v14 = vmul.f32 %v4973_v12, %v4965_v61  ;;  %v4887_v12 = vld [vmem:[%s5351_s29 + $0x28] ss:$16 sps:$4 sm:$0xff]  }
 0x4dc   : > { %v2519_v15 = vmul.f32 %v4975_v13, %v4967_v62  ;;  %v4892_v13 = vld [vmem:[%s5351_s29 + $0x44] ss:$16 sps:$4 sm:$0xff]  }
 0x4dd   : > { %v2524_v16 = vpack.c.bf16 %v2520_v14, %v2520_v14  ;;  %v4895_v14 = vld [vmem:[%s5351_s29 + $0x4c] ss:$16 sps:$4 sm:$0xff]  }
 0x4de   : > { %v2523_v18 = vpack.c.bf16 %v2519_v15, %v2519_v15  ;;  %v4890_v15 = vld [vmem:[%s5351_s29 + $0x40] ss:$16 sps:$4 sm:$0xff]  }
 0x4df   : > { %4665 = vmatmul.mubr.msk.bf16.vlgmr.msra.gmra.mrb[36].mxu1 %vm2476_vm3, %v2524_v16  ;;  %v4893_v16 = vld [vmem:[%s5351_s29 + $0x48] ss:$16 sps:$4 sm:$0xff]  }
 0x4e0   : > { %4659 = vmatmul.mubr.msk.bf16.vlgmr.msra.gmra.mrb[36].mxu0 %vm2476_vm3, %v2523_v18  ;;  %4680 = vmatprep.mubr.msk.bf16.mxu1 %vm5094_vm0, %v5093_v4 }
 0x4e1   : > { %4669 = vmatpush3.bf16.msra.mxu0 %v4870_v17  ;;  %4672 = vmatprep.mubr.msk.bf16.mxu0 %vm5094_vm0, %v5093_v4 }
 0x4e2   : > { %4670 = vmatprep.subr.bf16.mxu0 %v5093_v4  ;;  %4677 = vmatpush3.bf16.msra.mxu1 %v4872_v20 }
 0x4e3   : > { %4678 = vmatprep.subr.bf16.mxu1 %v5093_v4 }
 0x4e5   : > { %4671 = vmatpush3.bf16.msra.mxu0 %v4871_v19 }
 0x4e6   : > { %4684 = vmatprep.subr.bf16.mxu0 %v5093_v4  ;;  %4679 = vmatpush3.bf16.msra.mxu1 %v4873_v21  ;;  %v4898_v21 = vld [vmem:[%s5351_s29 + $0x64] ss:$16 sps:$4 sm:$0xff]  }
 0x4e7   : > { %4692 = vmatprep.subr.bf16.mxu1 %v5093_v4 }
 0x592   : > { %v2570_v22 = vpop.f32.mrb[32].mxu0 }
 0x593   : > { %v2714_v24 = vpack.c.bf16 %v2570_v22, %v2570_v22  ;;  %v4648_v25 = vpop.f32.mrb[33].mxu0  ;;  %v4901_v22 = vld [vmem:[%s5351_s29 + $0x6c] ss:$16 sps:$4 sm:$0xff]  }
 0x594   : > { %v2573_v26 = vpop.f32.mrb[34].mxu0  ;;  %v4904_v25 = vld [vmem:[%s5351_s29 + $0x84] ss:$16 sps:$4 sm:$0xff]  }
 0x595   : > { %v4649_v27 = vpop.f32.mrb[35].mxu0  ;;  %4673 = vmatmul.mubr.msk.bf16.vlgmr.msra.gmra.mrb[40].mxu0 %vm2291_vm1, %v2714_v24  ;;  %v4899_v24 = vld [vmem:[%s5351_s29 + $0x68] ss:$16 sps:$4 sm:$0xff]   ;;  %v4907_v26 = vld [vmem:[%s5351_s29 + $0x8c] ss:$16 sps:$4 sm:$0xff]  }
 0x596   : > { %v2616_v28 = vpop.f32.mrb[32].mxu1  ;;  %4685 = vmatpush3.bf16.msra.mxu0 %v4874_v23  ;;  %4688 = vmatprep.mubr.msk.bf16.mxu0 %vm5094_vm0, %v5093_v4  ;;  %v4896_v23 = vld [vmem:[%s5351_s29 + $0x60] ss:$16 sps:$4 sm:$0xff]  }
 0x597   : > { %v2715_v31 = vpack.c.bf16 %v2616_v28, %v2616_v28  ;;  %v4654_v32 = vpop.f32.mrb[33].mxu1  ;;  %4686 = vmatprep.subr.bf16.mxu0 %v5093_v4  ;;  %v4902_v27 = vld [vmem:[%s5351_s29 + $0x80] ss:$16 sps:$4 sm:$0xff]   ;;  %v4905_v28 = vld [vmem:[%s5351_s29 + $0x88] ss:$16 sps:$4 sm:$0xff]  }
 0x598   : > { %v2619_v33 = vpop.f32.mrb[34].mxu1  ;;  %v4911_v32 = vld [vmem:[%s5351_s29 + $0xa8] ss:$16 sps:$4 sm:$0xff]  }
 0x599   : > { %v4655_v35 = vpop.f32.mrb[35].mxu1  ;;  %4681 = vmatmul.mubr.msk.bf16.vlgmr.msra.gmra.mrb[40].mxu1 %vm2291_vm1, %v2715_v31  ;;  %v4908_v31 = vld [vmem:[%s5351_s29 + $0xa0] ss:$16 sps:$4 sm:$0xff]   ;;  %v4916_v33 = vld [vmem:[%s5351_s29 + $0xc4] ss:$16 sps:$4 sm:$0xff]  }
 0x59a   : > { %4693 = vmatpush3.bf16.msra.mxu1 %v4875_v29  ;;  %4687 = vmatpush3.bf16.msra.mxu0 %v4876_v30  ;;  %v4910_v29 = vld [vmem:[%s5351_s29 + $0xa4] ss:$16 sps:$4 sm:$0xff]   ;;  %v4913_v30 = vld [vmem:[%s5351_s29 + $0xac] ss:$16 sps:$4 sm:$0xff]  }
 0x59b   : > { %4694 = vmatprep.subr.bf16.mxu1 %v5093_v4  ;;  %4696 = vmatprep.mubr.msk.bf16.mxu1 %vm5094_vm0, %v5093_v4  ;;  %v4919_v35 = vld [vmem:[%s5351_s29 + $0xcc] ss:$16 sps:$4 sm:$0xff]  }
 0x59c   : > { %3208 = vmatprep.subr.bf16.mxu0 %v4880_v6  ;;  %v4943_v6 = vld [vmem:[%s5360_s16 + $0xe0] sm:$0xff]  }
 0x59e   : > { %4695 = vmatpush3.bf16.msra.mxu1 %v4877_v36  ;;  %v4914_v36 = vld [vmem:[%s5351_s29 + $0xc0] ss:$16 sps:$4 sm:$0xff]  }
 0x59f   : > { %3249 = vmatprep.subr.bf16.mxu1 %v4883_v8  ;;  %v4945_v8 = vld [vmem:[%s5360_s16 + $0xa0] sm:$0xff]  }
 0x5b2   : > { %v2708_v37 = vpop.f32.mrb[36].mxu1 }
 0x5b3   : > { %v2662_v38 = vpop.f32.mrb[36].mxu0  ;;  %v2717_v39 = vpack.c.bf16 %v2708_v37, %v2708_v37  ;;  %v4666_v40 = vpop.f32.mrb[37].mxu1  ;;  %v4917_v37 = vld [vmem:[%s5351_s29 + $0xc8] ss:$16 sps:$4 sm:$0xff]  }
 0x5b4   : > { %v2716_v41 = vpack.c.bf16 %v2662_v38, %v2662_v38  ;;  %v4660_v42 = vpop.f32.mrb[37].mxu0  ;;  %v2711_v43 = vpop.f32.mrb[38].mxu1  ;;  %v4920_v38 = vld [vmem:[%s5351_s29 + $0xe0] ss:$16 sps:$4 sm:$0xff]   ;;  %v4923_v40 = vld [vmem:[%s5351_s29 + $0xe8] ss:$16 sps:$4 sm:$0xff]  }
 0x5b5   : > { %v2665_v44 = vpop.f32.mrb[38].mxu0  ;;  %v4667_v45 = vpop.f32.mrb[39].mxu1  ;;  %4697 = vmatmul.mubr.msk.bf16.vlgmr.msra.gmra.mrb[44].mxu1 %vm2291_vm1, %v2717_v39  ;;  %v4922_v39 = vld [vmem:[%s5351_s29 + $0xe4] ss:$16 sps:$4 sm:$0xff]   ;;  %v5095_v42 = vmov 0  }
 0x5b6   : > { %v4661_v46 = vpop.f32.mrb[39].mxu0  ;;  %4689 = vmatmul.mubr.msk.bf16.vlgmr.msra.gmra.mrb[44].mxu0 %vm2291_vm1, %v2716_v41  ;;  %3250 = vmatpush1.bf16.msra.mxu1 %v4881_v7  ;;  %v4925_v41 = vld [vmem:[%s5351_s29 + $0xec] ss:$16 sps:$4 sm:$0xff]   ;;  %s5960_s29 = scalar_lea.vmem %s5959_s28, %s5280_s1  ;;  %v4944_v7 = vld [vmem:[%s5360_s16 + $0x20] sm:$0xff]  }
 0x5b7   : > { %3209 = vmatpush1.bf16.msra.mxu0 %v4878_v5  ;;  %3251 = vmatprep.subr.bf16.mxu1 %v4889_v10  ;;  %v4942_v5 = vld [vmem:[%s5360_s16 + $0x60] sm:$0xff]   ;;  %v4947_v10 = vld [vmem:[%s5360_s16 + $0xe8] sm:$0xff]  }
 0x5b8   : > { %3210 = vmatprep.subr.bf16.mxu0 %v4886_v9  ;;  %3240 = vmatprep.mubr.bf16.mxu0 %v5095_v42  ;;  %v4946_v9 = vld [vmem:[%s5360_s16 + $0x68] sm:$0xff]  }
 0x5b9   : > { %3281 = vmatprep.mubr.bf16.mxu1 %v5095_v42 }
 0x5ba   : > { %3252 = vmatpush1.bf16.msra.mxu1 %v4887_v12  ;;  %v4949_v12 = vld [vmem:[%s5360_s16 + $0xa8] sm:$0xff]  }
 0x5bb   : > { %3211 = vmatpush1.bf16.msra.mxu0 %v4884_v11  ;;  %3253 = vmatprep.subr.bf16.mxu1 %v4895_v14  ;;  %v4948_v11 = vld [vmem:[%s5360_s16 + $0x28] sm:$0xff]   ;;  %v4951_v14 = vld [vmem:[%s5360_s16 + $0xf0] sm:$0xff]  }
 0x5bc   : > { %3212 = vmatprep.subr.bf16.mxu0 %v4892_v13  ;;  %v4950_v13 = vld [vmem:[%s5360_s16 + $0x70] sm:$0xff]  }
 0x5be   : > { %3254 = vmatpush1.bf16.msra.mxu1 %v4893_v16  ;;  %v4953_v16 = vld [vmem:[%s5360_s16 + $0xb0] sm:$0xff]  }
 0x5bf   : > { %3213 = vmatpush1.bf16.msra.mxu0 %v4890_v15  ;;  %3255 = vmatprep.subr.bf16.mxu1 %v4901_v22  ;;  %v4952_v15 = vld [vmem:[%s5360_s16 + $0x30] sm:$0xff]  }
 0x5c0   : > { %3214 = vmatprep.subr.bf16.mxu0 %v4898_v21  ;;  %v3028_v21 = vlaneseq }
 0x5c2   : > { %3256 = vmatpush1.bf16.msra.mxu1 %v4899_v24  ;;  %v3029_v22 = vshrl.u32 %v3028_v21, 7 }
 0x5c3   : > { %3215 = vmatpush1.bf16.msra.mxu0 %v4896_v23  ;;  %3257 = vmatprep.subr.bf16.mxu1 %v4907_v26 }
 0x5c4   : > { %3216 = vmatprep.subr.bf16.mxu0 %v4904_v25  ;;  %v3030_v23 = vsub.s32 0, %v3029_v22  ;;  %v3038_v24 = vsub.s32 2, %v3029_v22  ;;  %v3026_v25 = vld [vmem:[%s900_s10] sm:$0xf]  ;;  %v3034_v26 = vsub.s32 1, %v3029_v22 }
 0x5c6   : > { %3258 = vmatpush1.bf16.msra.mxu1 %v4905_v28  ;;  %v3031_v28 = vrot.slane %v3026_v25, %v3030_v23 }
 0x5c7   : > { %3217 = vmatpush1.bf16.msra.mxu0 %v4902_v27  ;;  %3259 = vmatprep.subr.bf16.mxu1 %v4913_v30  ;;  %v3042_v27 = vsub.s32 3, %v3029_v22  ;;  %v3035_v30 = vrot.slane %v3026_v25, %v3034_v26 }
 0x5c8   : > { %3218 = vmatprep.subr.bf16.mxu0 %v4910_v29  ;;  %v3039_v29 = vrot.slane %v3026_v25, %v3038_v24 }
 0x5ca   : > { %3260 = vmatpush1.bf16.msra.mxu1 %v4911_v32 }
 0x5cb   : > { %3219 = vmatpush1.bf16.msra.mxu0 %v4908_v31  ;;  %3261 = vmatprep.subr.bf16.mxu1 %v4919_v35  ;;  %v3043_v31 = vrot.slane %v3026_v25, %v3042_v27 }
 0x5cc   : > { %3220 = vmatprep.subr.bf16.mxu0 %v4916_v33 }
 0x5ce   : > { %3262 = vmatpush1.bf16.msra.mxu1 %v4917_v37 }
 0x5cf   : > { %3221 = vmatpush1.bf16.msra.mxu0 %v4914_v36  ;;  %3263 = vmatprep.subr.bf16.mxu1 %v4925_v41 }
 0x5d0   : > { %3222 = vmatprep.subr.bf16.mxu0 %v4922_v39 }
 0x5d2   : > { %3264 = vmatpush1.bf16.msra.mxu1 %v4923_v40 }
 0x5d3   : > { %3223 = vmatpush1.bf16.msra.mxu0 %v4920_v38 }
 0x668   : > { %v2783_v47 = vpop.f32.mrb[40].mxu0 }
 0x669   : > { %v4674_v48 = vpop.f32.mrb[41].mxu0 }
 0x66a   : > { %v2786_v49 = vpop.f32.mrb[42].mxu0 }
 0x66b   : > { %v4675_v4 = vpop.f32.mrb[43].mxu0  ;;  %v4117_v49 = vld [vmem:[%s891_s27] ss:$0 sm:$0xff] }
 0x66c   : > { %v2838_v50 = vpop.f32.mrb[40].mxu1 }
 0x66d   : > { %v2954_v51 = vadd.f32 %v2838_v50, %v2783_v47  ;;  %v4682_v52 = vpop.f32.mrb[41].mxu1  ;;  %v4116_v47 = vld [vmem:[%s5960_s29] ss:$0 sm:$0xff] }
 0x66e   : > { %v2841_v53 = vpop.f32.mrb[42].mxu1  ;;  %v4926_v52 = vld [vmem:[%s5360_s16 + $0x40] sm:$0xff]  }
 0x66f   : > { %v4683_v54 = vpop.f32.mrb[43].mxu1  ;;  %v4927_v53 = vld [vmem:[%s5360_s16 + $0xc0] sm:$0xff]   ;;  %4336 = vmatprep.subr.bf16.mxu0 %v4926_v52 }
 0x670   : > { %v4928_v54 = vld [vmem:[%s5360_s16] sm:$0xff]   ;;  %4358 = vmatprep.subr.bf16.mxu1 %v4927_v53 }
 0x688   : > { %v2948_v55 = vpop.f32.mrb[44].mxu1 }
 0x689   : > { %v2893_v56 = vpop.f32.mrb[44].mxu0  ;;  %v4698_v57 = vpop.f32.mrb[45].mxu1 }
 0x68a   : > { %v2955_v58 = vadd.f32 %v2954_v51, %v2893_v56  ;;  %v4690_v59 = vpop.f32.mrb[45].mxu0  ;;  %v2951_v34 = vpop.f32.mrb[46].mxu1  ;;  %v4930_v56 = vld [vmem:[%s5360_s16 + $0x48] sm:$0xff]  }
 0x68b   : > { %v2896_v61 = vpop.f32.mrb[46].mxu0  ;;  %v4699_v62 = vpop.f32.mrb[47].mxu1  ;;  %v4931_v57 = vld [vmem:[%s5360_s16 + $0xc8] sm:$0xff]   ;;  %v4934_v34 = vld [vmem:[%s5360_s16 + $0x50] sm:$0xff]  }
 0x68c   : > { %v2956_v63 = vadd.f32 %v2955_v58, %v2948_v55  ;;  %v4691_v0 = vpop.f32.mrb[47].mxu0  ;;  %v4929_v55 = vld [vmem:[%s5360_s16 + $0x80] sm:$0xff]   ;;  %v4932_v58 = vld [vmem:[%s5360_s16 + $0x8] sm:$0xff]   ;;  %v4936_v61 = vld [vmem:[%s5360_s16 + $0x10] sm:$0xff]  }
 0x68d   : > { %v4933_v59 = vld [vmem:[%s5360_s16 + $0x88] sm:$0xff]   ;;  %v4937_v62 = vld [vmem:[%s5360_s16 + $0x90] sm:$0xff]   ;;  %v4939_v0 = vld [vmem:[%s5360_s16 + $0xd8] sm:$0xff]  }
 0x68e   : > { %v2964_v1 = vadd.f32 %v4115_v60, %v2956_v63  ;;  %v4935_v60 = vld [vmem:[%s5360_s16 + $0xd0] sm:$0xff]   ;;  %v4938_v63 = vld [vmem:[%s5360_s16 + $0x58] sm:$0xff]  }
 0x690   : > { %v5710_v3 = vadd.f32 %v4994_v2, %v2964_v1  ;;  %v4940_v1 = vld [vmem:[%s5360_s16 + $0x18] sm:$0xff]  }
 0x691   : > { %v4941_v2 = vld [vmem:[%s5360_s16 + $0x98] sm:$0xff]  }
 0x692   : > { %2966 = vadd.xlane.f32.xlu0 %v5710_v3 }
 0x71f   : > { %v2967_v17 = vpop.xlane.xlu0 %2966 }
 0x720   : > { %v2968_v18 = vmul.f32 0.0078125, %v2967_v17  ;;  %v4954_v17 = vld [vmem:[%s5360_s16 + $0x78] sm:$0xff]  }
 0x722   : > { %v2969_v19 = vsub.f32 %v5710_v3, %v2968_v18  ;;  %v4955_v18 = vld [vmem:[%s5360_s16 + $0xf8] sm:$0xff]  }
 0x724   : > { %v2970_v20 = vmul.f32 %v2969_v19, %v2969_v19 }
 0x726   : > { %2971 = vadd.xlane.f32.xlu1 %v2970_v20  ;;  %v4957_v20 = vld [vmem:[%s5360_s16 + $0xb8] sm:$0xff]  }
 0x7b3   : > { %v2972_v43 = vpop.xlane.xlu1 %2971 }
 0x7b4   : > { %v2973_v44 = vmul.f32 0.0078125, %v2972_v43 }
 0x7b6   : > { %v2974_v45 = vadd.f32 1e-05, %v2973_v44 }
 0x7b8   : > { %4976 = vrsqrt.f32 %v2974_v45 }
 0x7c2   : > { %v4977_v46 = vpop.eup %4976 }
 0x7c3   : > { %v2976_v48 = vmul.f32 %v4977_v46, %v2969_v19  ;;  %v4956_v19 = vld [vmem:[%s5360_s16 + $0x38] sm:$0xff]  }
 0x7c5   : > { %v2984_v4 = vmul.f32 %v4116_v47, %v2976_v48 }
 0x7c7   : > { %v2992_v50 = vadd.f32 %v4117_v49, %v2984_v4 }
 0x7c9   : > { %v2993_v51 = vpack.c.bf16 %v2992_v50, %v2992_v50 }
 0x7cb   : > { %3241 = vmatmul.mubr.bf16.vlgmr.msra.gmra.mrb[48].mxu0 %v2993_v51  ;;  %3282 = vmatmul.mubr.bf16.vlgmr.msra.gmra.mrb[48].mxu1 %v2993_v51 }
 0x7cc   : > { %4337 = vmatpush3.bf16.msra.mxu0 %v4928_v54  ;;  %4359 = vmatpush3.bf16.msra.mxu1 %v4929_v55 }
 0x7cd   : > { %4338 = vmatprep.subr.bf16.mxu0 %v4930_v56  ;;  %4360 = vmatprep.subr.bf16.mxu1 %v4931_v57 }
 0x7d0   : > { %4339 = vmatpush3.bf16.msra.mxu0 %v4932_v58  ;;  %4361 = vmatpush3.bf16.msra.mxu1 %v4933_v59 }
 0x7d1   : > { %4340 = vmatprep.subr.bf16.mxu0 %v4934_v34  ;;  %4362 = vmatprep.subr.bf16.mxu1 %v4935_v60 }
 0x7d4   : > { %4341 = vmatpush3.bf16.msra.mxu0 %v4936_v61  ;;  %4363 = vmatpush3.bf16.msra.mxu1 %v4937_v62 }
 0x7d5   : > { %4342 = vmatprep.subr.bf16.mxu0 %v4938_v63  ;;  %4364 = vmatprep.subr.bf16.mxu1 %v4939_v0 }
 0x7d8   : > { %4343 = vmatpush3.bf16.msra.mxu0 %v4940_v1  ;;  %4365 = vmatpush3.bf16.msra.mxu1 %v4941_v2 }
 0x7d9   : > { %4344 = vmatprep.subr.bf16.mxu0 %v4942_v5  ;;  %4366 = vmatprep.subr.bf16.mxu1 %v4943_v6 }
 0x7dc   : > { %4345 = vmatpush3.bf16.msra.mxu0 %v4944_v7  ;;  %4367 = vmatpush3.bf16.msra.mxu1 %v4945_v8 }
 0x7dd   : > { %4346 = vmatprep.subr.bf16.mxu0 %v4946_v9  ;;  %4368 = vmatprep.subr.bf16.mxu1 %v4947_v10 }
 0x7e0   : > { %4347 = vmatpush3.bf16.msra.mxu0 %v4948_v11  ;;  %4369 = vmatpush3.bf16.msra.mxu1 %v4949_v12  ;;  %v4154_v11 = vld [vmem:[%s908_s12] ss:$0 sm:$0xff] }
 0x7e1   : > { %4348 = vmatprep.subr.bf16.mxu0 %v4950_v13  ;;  %4370 = vmatprep.subr.bf16.mxu1 %v4951_v14 }
 0x7e4   : > { %4349 = vmatpush3.bf16.msra.mxu0 %v4952_v15  ;;  %4371 = vmatpush3.bf16.msra.mxu1 %v4953_v16 }
 0x7e5   : > { %4350 = vmatprep.subr.bf16.mxu0 %v4954_v17  ;;  %4372 = vmatprep.subr.bf16.mxu1 %v4955_v18 }
 0x7e8   : > { %4351 = vmatpush3.bf16.msra.mxu0 %v4956_v19  ;;  %4373 = vmatpush3.bf16.msra.mxu1 %v4957_v20 }
 0x89e   : > { %v3242_v32 = vpop.f32.mrb[48].mxu0  ;;  %v3283_v33 = vpop.f32.mrb[48].mxu1 }
 0x89f   : > { %v3243_v35 = vadd.f32 %v3242_v32, %v3031_v28  ;;  %v3284_v36 = vadd.f32 %v3283_v33, %v3039_v29  ;;  %v3244_v37 = vpop.f32.mrb[49].mxu0  ;;  %v3285_v38 = vpop.f32.mrb[49].mxu1  ;;  %v4189_v32 = vld [vmem:[%s5965_s15] ss:$0 sm:$0xff] (!%p4187_p1) }
 0x8a0   : > { %v3245_v39 = vadd.f32 %v3244_v37, %v3035_v30  ;;  %v3286_v40 = vadd.f32 %v3285_v38, %v3043_v31  ;;  %v3246_v41 = vpop.f32.mrb[50].mxu0  ;;  %v3287_v42 = vpop.f32.mrb[50].mxu1 }
 0x8a1   : > { %v4150_v43 = vmul.f32 -1.702, %v3243_v35  ;;  %v4152_v44 = vmul.f32 -1.702, %v3284_v36  ;;  %v3247_v45 = vpop.f32.mrb[51].mxu0  ;;  %v3288_v46 = vpop.f32.mrb[51].mxu1 }
 0x8a2   : > { %v4151_v47 = vmul.f32 -1.702, %v3245_v39  ;;  %v4153_v48 = vmul.f32 -1.702, %v3286_v40 }
 0x8a3   : > { %v3298_v49 = vmul.f32 1.442695, %v4150_v43  ;;  %v3302_v4 = vmul.f32 1.442695, %v4152_v44 }
 0x8a4   : > { %v3300_v50 = vmul.f32 1.442695, %v4151_v47  ;;  %v3304_v51 = vmul.f32 1.442695, %v4153_v48 }
 0x8a5   : > { %4978 = vpow2.f32 %v3298_v49 }
 0x8a6   : > { %4980 = vpow2.f32 %v3302_v4 }
 0x8a7   : > { %4982 = vpow2.f32 %v3300_v50 }
 0x8a8   : > { %4984 = vpow2.f32 %v3304_v51 }
 0x8af   : > { %v4979_v52 = vpop.eup %4978 }
 0x8b0   : > { %v4981_v53 = vpop.eup %4980  ;;  %v3306_v54 = vadd.f32 1.0, %v4979_v52 }
 0x8b1   : > { %v4983_v55 = vpop.eup %4982  ;;  %v3308_v56 = vadd.f32 1.0, %v4981_v53 }
 0x8b2   : > { %v4985_v57 = vpop.eup %4984  ;;  %4986 = vrcp.f32 %v3306_v54  ;;  %v3307_v58 = vadd.f32 1.0, %v4983_v55 }
 0x8b3   : > { %4988 = vrcp.f32 %v3308_v56  ;;  %v3309_v59 = vadd.f32 1.0, %v4985_v57 }
 0x8b4   : > { %4990 = vrcp.f32 %v3307_v58 }
 0x8b5   : > { %4992 = vrcp.f32 %v3309_v59 }
 0x8bc   : > { %v4987_v34 = vpop.eup %4986 }
 0x8bd   : > { %v4989_v60 = vpop.eup %4988  ;;  %v3318_v62 = vmul.f32 %v4987_v34, %v3243_v35 }
 0x8be   : > { %v4991_v61 = vpop.eup %4990  ;;  %v3320_v0 = vmul.f32 %v4989_v60, %v3284_v36 }
 0x8bf   : > { %v4993_v63 = vpop.eup %4992  ;;  %v3319_v1 = vmul.f32 %v4991_v61, %v3245_v39  ;;  %v3322_v6 = vpack.c.bf16 %v3318_v62, %v3318_v62 }
 0x8c0   : > { %v3321_v2 = vmul.f32 %v4993_v63, %v3286_v40  ;;  %v3324_v8 = vpack.c.bf16 %v3320_v0, %v3320_v0 }
 0x8c1   : > { %v3323_v5 = vpack.c.bf16 %v3319_v1, %v3319_v1 }
 0x8c2   : > { %v3325_v7 = vpack.c.bf16 %v3321_v2, %v3321_v2 }
 0x8c3   : > { %3621 = vmatprep.mubr.bf16.mxu0 %v3323_v5 }
 0x8c4   : > { %3661 = vmatprep.mubr.bf16.mxu1 %v3325_v7  ;;  %3622 = vmatmul.mubr.bf16.vlgmr.msra.gmra.mrb[52].mxu0 %v3322_v6 }
 0x8c5   : > { %3662 = vmatmul.mubr.bf16.vlgmr.msra.gmra.mrb[52].mxu1 %v3324_v8 }
 0x997   : > { %v4352_v9 = vpop.f32.mrb[52].mxu0 }
 0x998   : > { %v4374_v10 = vpop.f32.mrb[52].mxu1  ;;  %v4353_v12 = vpop.f32.mrb[53].mxu0 }
 0x999   : > { %v4354_v13 = vadd.f32 %v4353_v12, %v4352_v9  ;;  %v4375_v14 = vpop.f32.mrb[53].mxu1  ;;  %v4355_v15 = vpop.f32.mrb[54].mxu0 }
 0x99a   : > { %v4376_v16 = vadd.f32 %v4375_v14, %v4374_v10  ;;  %v4377_v17 = vpop.f32.mrb[54].mxu1  ;;  %v4356_v18 = vpop.f32.mrb[55].mxu0 }
 0x99b   : > { %v3624_v19 = vadd.f32 %v4354_v13, %v4154_v11  ;;  %v4378_v20 = vpop.f32.mrb[55].mxu1  ;;  %3674 = sbr.rel (%p4187_p1) target bundleno = 2777 (0xad9), region = 108 }
 0x99d   : > { %v3664_v21 = vadd.f32 %v4376_v16, %v3624_v19 }
 0x99f   : > { %v3669_v22 = vadd.f32 %v3664_v21, %v5710_v3  ;;  %v4188_v3 = vld [vmem:[%s5964_s3] ss:$0 sm:$0xff] (!%p4187_p1) }
 0x9a1   : > { %3670 = vst [vmem:[#allocation2] sm:$0xff] %v3669_v22  ;;  %3675 = vadd.xlane.f32.xlu0 (!%p4187_p1), %v3669_v22 }
 0xa2e   : > { %v3676_v23 = vpop.xlane.xlu0 %3675 }
 0xa2f   : > { %v3677_v24 = vmul.f32 0.0078125, %v3676_v23 }
 0xa31   : > { %v3678_v25 = vsub.f32 %v3669_v22, %v3677_v24 }
 0xa33   : > { %v3679_v26 = vmul.f32 %v3678_v25, %v3678_v25 }
 0xa35   : > { %3680 = vadd.xlane.f32.xlu0 %v3679_v26 }
 0xac2   : > { %v3681_v27 = vpop.xlane.xlu0 %3680 }
 0xac3   : > { %v3682_v28 = vmul.f32 0.0078125, %v3681_v27 }
 0xac5   : > { %v3683_v29 = vadd.f32 1e-05, %v3682_v28 }
 0xac7   : > { %4995 = vrsqrt.f32 %v3683_v29 }
 0xad1   : > { %v4996_v30 = vpop.eup %4995 }
 0xad2   : > { %v3685_v31 = vmul.f32 %v4996_v30, %v3678_v25 }
 0xad4   : > { %v3693_v33 = vmul.f32 %v4188_v3, %v3685_v31 }
 0xad6   : > { %v3701_v35 = vadd.f32 %v4189_v32, %v3693_v33 }
 0xad8   : > { %3702 = vst [vmem:[%s840_s8] sm:$0xff] %v3701_v35 }
 0xad9 PF: > { %s5966_s23 = sld [smem:[#allocation10_spill]]  ;;  %s5967_s26 = sld [smem:[#allocation7_spill]] }
 0xada   : > { %s5969_s17 = sld [smem:[#allocation38_spill]]  ;;  %s3717_s7 = sshll.u32 %s840_s8, 4  ;;  %s3718_s7 = int_to_ptr.vmem [resolvable:$true] %s3717_s7 }
 0xadb   : > { %s4997_s9 = scalar_lea.vmem %s3718_s7, 128  ;;  %s5096_s18 = smov [#allocation3]  }
 0xadc   : > { %p4998_p2 = scmp.ne.s32.totalorder %s3718_s7, %s4997_s9  ;;  %s5001_s27 = sshll.u32 %s5096_s18, 4  ;;  %s5002_s27 = int_to_ptr.vmem [resolvable:$false] %s5001_s27 }
 0xadd   : > { %s5003_s4 = scalar_lea.vmem %s5002_s27, 256  ;;  %p5004_p6 = scmp.lt.s32.totalorder %s3718_s7, %s5002_s27 }
 0xade   : > { %p4999_p4 = pnand %p4998_p2, %p5251_p3  ;;  %p5005_p7 = scmp.lt.s32.totalorder %s5003_s4, %s4997_s9 }
 0xadf   : > { %s4191_s21 = sshll.u32 %s5966_s23, 7  ;;  %s5970_s28 = sand.u32 1, %s5967_s26  }
 0xae0   : > { %s5812_s6 = scalar_lea.hbm %s5969_s17, %s4191_s21  ;;  %s3704_s29 = scalar_lea.sflag [#allocation4], %s5970_s28 }
 0xae1   : > { %p5000_p5 = pneg %p4999_p4  ;;  %p5006_p8 = por %p5005_p7, %p5004_p6 }
 0xae3   : > { %p5007_p10 = pnand %p5006_p8, %p5000_p5 }
 0xae5   : > { %5010 = shalt.err (!%p5007_p10)
}
 0xae6   : > { %s5011_s25 = scalar_lea.hbm %s5812_s6, 128  ;;  %s5015_s10 = scalar_lea.hbm %s5969_s17, 256 }
 0xae7   : > { %p5012_p11 = scmp.ne.s32.totalorder %s5812_s6, %s5011_s25  ;;  %p5016_p0 = scmp.lt.u32.totalorder %s5812_s6, %s5969_s17 }
 0xae8   : > { %p5017_p1 = scmp.lt.u32.totalorder %s5015_s10, %s5011_s25  ;;  %p5019_p4 = scmp.lt.u32.totalorder %s5011_s25, %s5812_s6 }
 0xae9   : > { %p5013_p12 = pnand %p5012_p11, %p5251_p3 }
 0xaea   : > { %p5018_p2 = por %p5017_p1, %p5016_p0 }
 0xaeb   : > { %p5014_p13 = pneg %p5013_p12 }
 0xaec   : > { %p5020_p5 = por %p5019_p4, %p5018_p2 }
 0xaee   : > { %p5021_p6 = pnand %p5020_p5, %p5014_p13 }
 0xaf0   : > { %5024 = shalt.err (!%p5021_p6)
}
 0xaf1   : > { %4700 = dma.vmem_to_hbm [thread:$0]  (%p5251_p3), %s3718_s7, 128, %s5812_s6, %s3704_s29  }
 0xaf2 PF: > { %s5971_s30 = sld [smem:[#allocation13_spill]]  ;;  %s5972_s12 = sld [smem:[#allocation6_spill]] }
 0xaf8   : > { %p4706_p7 = scmp.ge.s32.totalorder %s5971_s30, 2  ;;  %s3729_s3 = sand.u32 1, %s5972_s12  }
 0xaf9   : > { %s3730_s20 = scalar_lea.sflag [#allocation4], %s3729_s3 }
 0xafa   : > { %p4703_p8 = pnand %p4706_p7, %p5261_p9 }
 0xafc   : > { %5058 = dma.done.wait (!%p4703_p8), %s3730_s20, 128  }
 0xafd   : > { %5060 = vsyncadd (!%p4703_p8), %s3730_s20, 4294967168  ;;  %s33_s26 = sadd.s32 1, %s5971_s30   ;;  %s5974_s1 = sld [smem:[#allocation7_spill]] }
 0xafe   : > { %p30_p10 = scmp.ge.s32.totalorder %s33_s26, 6   ;;  %s5975_s22 = sld [smem:[#allocation8_spill]] }
 0xaff   : > { %s5976_s23 = sld [smem:[#allocation18_spill]]  ;;  %s5977_s24 = sld [smem:[#allocation11_spill]] }
 0xb00   : > { %s5978_s2 = sld [smem:[#allocation12_spill]]  ;;  %s5979_s25 = sld [smem:[#allocation14_spill]] }
 0xb01   : > { %s5980_s3 = sld [smem:[#allocation16_spill]]  ;;  %32 = sbr.rel (!%p30_p10) target bundleno = 24 (0x18), region = 191 }
 0xb08   :  { %3735 = vsyncpa [#allocation4], 1 }
 0xb09   :  { %3737 = vsyncpa [#allocation4 + $0x1], 1 }

</bundles_post_ra>
